<compile_context>
chip_gen: v5e
topology: v5e:2x2
jax: 0.10.0
libtpu: 0.0.40
codegen_flags: <defaults>
</compile_context>

<pallas_src>
import functools

import jax
import jax.numpy as jnp
from jax.experimental import pallas as pl
from jax.experimental.pallas import tpu as pltpu

EPS = 1e-5          # nn.BatchNorm2d default eps
NEG_SLOPE = 0.2     # LeakyReLU(0.2)


def _leaky(x):
    # For 0 < slope < 1, LeakyReLU(x) == max(x, slope*x): one VPU op, no select.
    return jnp.maximum(x, NEG_SLOPE * x)


def _bn_train(acc, gamma, beta):
    # Train-mode BatchNorm (batch stats, biased variance), single pass over the
    # live f32 accumulator: var = E[x^2] - mean^2.
    mean = jnp.mean(acc, axis=0, keepdims=True)
    msq = jnp.mean(acc * acc, axis=0, keepdims=True)
    var = msq - mean * mean
    scale = jax.lax.rsqrt(var + EPS) * gamma
    return (acc - mean) * scale + beta


def resxblock_kernel(p1_ref, w1sc_ref, w2_ref, bnp_ref, out_ref, *, R, Wo, Cpad):
    rows = R * Wo

    # Packed BN params (8, Cpad) f32: rows 0..5 = g1, b1, g2, b2, gsc, bsc_bn.
    bnp = bnp_ref[...]
    g1, b1 = bnp[0:1, :], bnp[1:2, :]
    g2, b2 = bnp[2:3, :], bnp[3:4, :]
    gsc, bsc = bnp[4:5, :], bnp[5:6, :]

    # ---- conv1 (1x3, stride (1,2), pad (0,1)) + 1x1 shortcut: ONE im2col matmul.
    # LHS was prepared lane-packed in the wrapper; cols [0:Cpad]=conv1, [Cpad:]=shortcut.
    acc = jnp.dot(p1_ref[...], w1sc_ref[...], preferred_element_type=jnp.float32)
    acc1 = acc[:, :Cpad]          # conv1 output    (128-lane aligned slice: free)
    accsc = acc[:, Cpad:]         # shortcut output

    h1 = _leaky(_bn_train(acc1, g1, b1))
    h1b = h1.astype(jnp.bfloat16).reshape(R, Wo, Cpad)

    # ---- conv2 (1x3, stride 1, pad (0,1)): W halo in-register (per-image-row zero
    # padding), then three lane-aligned (rows,Cpad)x(Cpad,Cpad) MXU matmuls summed
    # in f32 (no 3*Cpad-wide concatenated LHS is materialized).
    zc = jnp.zeros((R, 1, Cpad), jnp.bfloat16)
    h_l = jnp.concatenate([zc, h1b[:, :Wo - 1, :]], axis=1).reshape(rows, Cpad)
    h_r = jnp.concatenate([h1b[:, 1:, :], zc], axis=1).reshape(rows, Cpad)
    h_c = h1b.reshape(rows, Cpad)

    acc2 = jnp.dot(h_l, w2_ref[0], preferred_element_type=jnp.float32)
    acc2 = acc2 + jnp.dot(h_c, w2_ref[1], preferred_element_type=jnp.float32)
    acc2 = acc2 + jnp.dot(h_r, w2_ref[2], preferred_element_type=jnp.float32)

    h2 = _bn_train(acc2, g2, b2)

    # ---- shortcut BN (conv bias omitted: cancelled exactly by BN mean subtraction)
    idn = _bn_train(accsc, gsc, bsc)

    out_ref[...] = _leaky(h2 + idn)


def resxblock_pallas(x_nchw, p):
    N, Cin, H, W = x_nchw.shape
    Cout = p["w1"].shape[0]
    Cpad = max(128, ((Cout + 127) // 128) * 128)     # lane-dense channel axis
    R = N * H
    We = W + (W % 2)
    Wo = We // 2                                     # == floor((W-1)/2) + 1
    rows = R * Wo

    # NCHW -> NHWC, W padded even, stride-2 phase split and conv1/shortcut im2col,
    # all done once in the wrapper (fused by XLA into one tiny pass over the input),
    # emitted directly in bf16 (MXU operand dtype).
    x = jnp.transpose(x_nchw, (0, 2, 3, 1))
    if W % 2:
        x = jnp.pad(x, ((0, 0), (0, 0), (0, 1), (0, 0)))
    x = x.reshape(R, We, Cin)
    xe = x[:, 0::2, :]                               # x[..., 2*wo,   :]
    xo = x[:, 1::2, :]                               # x[..., 2*wo+1, :]
    # Taps for output wo are x[2wo-1], x[2wo], x[2wo+1] = xo[wo-1] (0 at wo=0), xe[wo], xo[wo].
    xo_prev = jnp.concatenate([jnp.zeros((R, 1, Cin), x.dtype), xo[:, :Wo - 1, :]], axis=1)
    p1 = jnp.concatenate([xo_prev, xe, xo], axis=-1).reshape(rows, 3 * Cin)
    p1 = p1.astype(jnp.bfloat16)

    # Combined RHS for conv1 + 1x1 shortcut, zero-padded to Cpad lanes, bf16.
    # Row index = kw*Cin + ci; cols [0:Cpad] = conv1, cols [Cpad:2*Cpad] = shortcut
    # (shortcut only sees the center tap xe -> rows Cin..2*Cin).
    w1 = jnp.transpose(p["w1"][:, :, 0, :], (2, 1, 0)).reshape(3 * Cin, Cout)
    wsc = jnp.transpose(p["wsc"][:, :, 0, 0], (1, 0))                          # (Cin, Cout)
    w1sc = jnp.zeros((3 * Cin, 2 * Cpad), jnp.float32)
    w1sc = w1sc.at[:, :Cout].set(w1)
    w1sc = w1sc.at[Cin:2 * Cin, Cpad:Cpad + Cout].set(wsc)
    w1sc = w1sc.astype(jnp.bfloat16)

    # conv2 per-tap RHS: (3, Cpad, Cpad), [kw, ci, co].
    w2 = jnp.transpose(p["w2"][:, :, 0, :], (2, 1, 0))                         # (3, Cout, Cout)
    w2p = jnp.zeros((3, Cpad, Cpad), jnp.float32).at[:, :Cout, :Cout].set(w2)
    w2p = w2p.astype(jnp.bfloat16)

    def padvec(v, fill):
        return jnp.full((Cpad,), fill, jnp.float32).at[:Cout].set(v.astype(jnp.float32))

    # Packed BN params: one (8, Cpad) f32 slab (sublane-aligned) instead of six DMAs.
    # p["bsc"] (shortcut conv bias) is mathematically cancelled by train-mode BN.
    bnp = jnp.stack([padvec(p["g1"], 1.0), padvec(p["b1"], 0.0),
                     padvec(p["g2"], 1.0), padvec(p["b2"], 0.0),
                     padvec(p["gsc"], 1.0), padvec(p["bsc_bn"], 0.0),
                     jnp.zeros((Cpad,), jnp.float32), jnp.zeros((Cpad,), jnp.float32)],
                    axis=0)

    kernel = functools.partial(resxblock_kernel, R=R, Wo=Wo, Cpad=Cpad)
    inputs = (p1, w1sc, w2p, bnp)

    io_bytes = rows * Cpad * 4 + sum(int(a.size) * a.dtype.itemsize for a in inputs)
    # Headroom for in-kernel accumulators / halo buffers; capped at the v7x
    # 64 MiB per-TensorCore VMEM budget.
    vmem_limit = int(min(64 * 1024 * 1024, max(16 * 1024 * 1024, 16 * io_bytes)))

    vmem = pl.BlockSpec(memory_space=pltpu.MemorySpace.VMEM)
    # TODO(synk): for shapes that do not fit a single VMEM-resident block (v7x:
    # 64 MiB/TC), tile over the row axis with a grid + two-pass BN (partial
    # sum / sum-sq accumulators over an "arbitrary" axis) and mark the row axis
    # "parallel" to shard across the two v7x TensorCores.
    out2d = pl.pallas_call(
        kernel,
        out_shape=jax.ShapeDtypeStruct((rows, Cpad), jnp.float32),
        in_specs=[vmem] * len(inputs),
        out_specs=vmem,
        compiler_params=pltpu.CompilerParams(vmem_limit_bytes=vmem_limit),
    )(*inputs)

    out = out2d[:, :Cout].reshape(N, H, Wo, Cout)
    return jnp.transpose(out, (0, 3, 1, 2))          # NCHW: (N, Cout, H, Wo)


def resxblock_ref(x, p):
    """Pure-JAX reference (PyTorch semantics, train-mode BN, f32 HIGHEST)."""
    def conv(x, w, stride, pad_w):
        return jax.lax.conv_general_dilated(
            x, w, window_strides=stride, padding=[(0, 0), (pad_w, pad_w)],
            dimension_numbers=("NCHW", "OIHW", "NCHW"),
            precision=jax.lax.Precision.HIGHEST)

    def bn(x, g, b):
        mean = x.mean(axis=(0, 2, 3), keepdims=True)
        var = ((x - mean) ** 2).mean(axis=(0, 2, 3), keepdims=True)
        return (x - mean) / jnp.sqrt(var + EPS) * g.reshape(1, -1, 1, 1) \
            + b.reshape(1, -1, 1, 1)

    h = conv(x, p["w1"], (1, 2), 1)
    h = _leaky(bn(h, p["g1"], p["b1"]))
    h = conv(h, p["w2"], (1, 1), 1)
    h = bn(h, p["g2"], p["b2"])
    idn = conv(x, p["wsc"], (1, 2), 0) + p["bsc"].reshape(1, -1, 1, 1)
    idn = bn(idn, p["gsc"], p["bsc_bn"])
    return _leaky(h + idn)


if __name__ == "__main__":
    N, Cin, Cout, H, W = 2, 4, 8, 16, 16
    keys = jax.random.split(jax.random.PRNGKey(0), 11)
    params = {
        "w1":     0.1 * jax.random.normal(keys[0], (Cout, Cin, 1, 3), jnp.float32),
        "g1":     1.0 + 0.1 * jax.random.normal(keys[1], (Cout,), jnp.float32),
        "b1":     0.1 * jax.random.normal(keys[2], (Cout,), jnp.float32),
        "w2":     0.1 * jax.random.normal(keys[3], (Cout, Cout, 1, 3), jnp.float32),
        "g2":     1.0 + 0.1 * jax.random.normal(keys[4], (Cout,), jnp.float32),
        "b2":     0.1 * jax.random.normal(keys[5], (Cout,), jnp.float32),
        "wsc":    0.1 * jax.random.normal(keys[6], (Cout, Cin, 1, 1), jnp.float32),
        "bsc":    0.1 * jax.random.normal(keys[7], (Cout,), jnp.float32),
        "gsc":    1.0 + 0.1 * jax.random.normal(keys[8], (Cout,), jnp.float32),
        "bsc_bn": 0.1 * jax.random.normal(keys[9], (Cout,), jnp.float32),
    }
    x = jax.random.normal(keys[10], (N, Cin, H, W), jnp.float32)

    out = jax.block_until_ready(jax.jit(resxblock_pallas)(x, params))
    ref = resxblock_ref(x, params)

    assert out.shape == ref.shape == (N, Cout, H, W // 2), (out.shape, ref.shape)
    max_err = float(jnp.max(jnp.abs(out - ref)))
    rel_err = float(jnp.linalg.norm(out - ref) / jnp.linalg.norm(ref))
    # bf16 MXU operands vs. the f32-HIGHEST reference -> loosened (still bug-catching) gate.
    assert max_err < 6e-2 and rel_err < 2e-2, (max_err, rel_err)
    print("KERNEL_OK")
</pallas_src>

<mosaic_0001>
module attributes {stable_mosaic.version = 11 : i64} {
  func.func @resxblock_kernel(%arg0: memref<256x12xbf16, #tpu.memory_space<vmem>>, %arg1: memref<12x256xbf16, #tpu.memory_space<vmem>>, %arg2: memref<3x128x128xbf16, #tpu.memory_space<vmem>>, %arg3: memref<8x128xf32, #tpu.memory_space<vmem>>, %arg4: memref<256x128xf32, #tpu.memory_space<vmem>>) attributes {dimension_semantics = [], scalar_prefetch = 0 : i64, scratch_operands = 0 : i64, tpu.core_type = #tpu.core_type<tc>} {
    %c0 = arith.constant 0 : index
    %c0_0 = arith.constant 0 : index
    %0 = vector.load %arg3[%c0, %c0_0] : memref<8x128xf32, #tpu.memory_space<vmem>>, vector<8x128xf32>
    %1 = vector.extract_strided_slice %0 {offsets = [0, 0], sizes = [1, 128], strides = [1, 1]} : vector<8x128xf32> to vector<1x128xf32>
    %2 = vector.extract_strided_slice %0 {offsets = [1, 0], sizes = [1, 128], strides = [1, 1]} : vector<8x128xf32> to vector<1x128xf32>
    %3 = vector.extract_strided_slice %0 {offsets = [2, 0], sizes = [1, 128], strides = [1, 1]} : vector<8x128xf32> to vector<1x128xf32>
    %4 = vector.extract_strided_slice %0 {offsets = [3, 0], sizes = [1, 128], strides = [1, 1]} : vector<8x128xf32> to vector<1x128xf32>
    %5 = vector.extract_strided_slice %0 {offsets = [4, 0], sizes = [1, 128], strides = [1, 1]} : vector<8x128xf32> to vector<1x128xf32>
    %6 = vector.extract_strided_slice %0 {offsets = [5, 0], sizes = [1, 128], strides = [1, 1]} : vector<8x128xf32> to vector<1x128xf32>
    %c0_1 = arith.constant 0 : index
    %c0_2 = arith.constant 0 : index
    %7 = vector.load %arg0[%c0_1, %c0_2] : memref<256x12xbf16, #tpu.memory_space<vmem>>, vector<256x12xbf16>
    %c0_3 = arith.constant 0 : index
    %c0_4 = arith.constant 0 : index
    %8 = vector.load %arg1[%c0_3, %c0_4] : memref<12x256xbf16, #tpu.memory_space<vmem>>, vector<12x256xbf16>
    %cst = arith.constant dense<0.000000e+00> : vector<256x256xf32>
    %9 = tpu.matmul %7, %8, %cst {dimension_numbers = #tpu.dot_dimension_numbers<[1], [0], [0], [1], [0, 0, 1, 1], [], []>} : vector<256x12xbf16>, vector<12x256xbf16>, vector<256x256xf32> -> vector<256x256xf32>
    %10 = vector.extract_strided_slice %9 {offsets = [0, 0], sizes = [256, 128], strides = [1, 1]} : vector<256x256xf32> to vector<256x128xf32>
    %11 = vector.extract_strided_slice %9 {offsets = [0, 128], sizes = [256, 128], strides = [1, 1]} : vector<256x256xf32> to vector<256x128xf32>
    %cst_5 = arith.constant dense<0.000000e+00> : vector<128xf32>
    %12 = vector.multi_reduction <add>, %10, %cst_5 [0] : vector<256x128xf32> to vector<128xf32>
    %13 = vector.shape_cast %12 : vector<128xf32> to vector<1x128xf32>
    %cst_6 = arith.constant 2.560000e+02 : f32
    %14 = vector.broadcast %cst_6 : f32 to vector<1x128xf32>
    %15 = arith.divf %13, %14 : vector<1x128xf32>
    %16 = arith.mulf %10, %10 : vector<256x128xf32>
    %cst_7 = arith.constant dense<0.000000e+00> : vector<128xf32>
    %17 = vector.multi_reduction <add>, %16, %cst_7 [0] : vector<256x128xf32> to vector<128xf32>
    %18 = vector.shape_cast %17 : vector<128xf32> to vector<1x128xf32>
    %cst_8 = arith.constant 2.560000e+02 : f32
    %19 = vector.broadcast %cst_8 : f32 to vector<1x128xf32>
    %20 = arith.divf %18, %19 : vector<1x128xf32>
    %21 = arith.mulf %15, %15 : vector<1x128xf32>
    %22 = arith.subf %20, %21 : vector<1x128xf32>
    %cst_9 = arith.constant 9.99999974E-6 : f32
    %23 = vector.broadcast %cst_9 : f32 to vector<1x128xf32>
    %24 = arith.addf %22, %23 : vector<1x128xf32>
    %25 = math.rsqrt %24 : vector<1x128xf32>
    %26 = arith.mulf %25, %1 : vector<1x128xf32>
    %27 = vector.broadcast %15 : vector<1x128xf32> to vector<256x128xf32>
    %28 = arith.subf %10, %27 : vector<256x128xf32>
    %29 = vector.broadcast %26 : vector<1x128xf32> to vector<256x128xf32>
    %30 = arith.mulf %28, %29 : vector<256x128xf32>
    %31 = vector.broadcast %2 : vector<1x128xf32> to vector<256x128xf32>
    %32 = arith.addf %30, %31 : vector<256x128xf32>
    %cst_10 = arith.constant 2.000000e-01 : f32
    %33 = vector.broadcast %cst_10 : f32 to vector<256x128xf32>
    %34 = arith.mulf %33, %32 : vector<256x128xf32>
    %35 = arith.maximumf %32, %34 : vector<256x128xf32>
    %36 = arith.truncf %35 : vector<256x128xf32> to vector<256x128xbf16>
    %37 = vector.shape_cast %36 : vector<256x128xbf16> to vector<32x8x128xbf16>
    %cst_11 = arith.constant 0.000000e+00 : bf16
    %38 = vector.broadcast %cst_11 : bf16 to vector<32x1x128xbf16>
    %39 = vector.extract_strided_slice %37 {offsets = [0, 0, 0], sizes = [32, 7, 128], strides = [1, 1, 1]} : vector<32x8x128xbf16> to vector<32x7x128xbf16>
    %40 = tpu.concatenate %38, %39 in 1 : vector<32x1x128xbf16>, vector<32x7x128xbf16> -> vector<32x8x128xbf16>
    %41 = vector.shape_cast %40 : vector<32x8x128xbf16> to vector<256x128xbf16>
    %42 = vector.extract_strided_slice %37 {offsets = [0, 1, 0], sizes = [32, 7, 128], strides = [1, 1, 1]} : vector<32x8x128xbf16> to vector<32x7x128xbf16>
    %43 = tpu.concatenate %42, %38 in 1 : vector<32x7x128xbf16>, vector<32x1x128xbf16> -> vector<32x8x128xbf16>
    %44 = vector.shape_cast %43 : vector<32x8x128xbf16> to vector<256x128xbf16>
    %45 = vector.shape_cast %37 : vector<32x8x128xbf16> to vector<256x128xbf16>
    %c0_12 = arith.constant 0 : index
    %c0_13 = arith.constant 0 : index
    %c0_14 = arith.constant 0 : index
    %46 = vector.load %arg2[%c0_12, %c0_13, %c0_14] : memref<3x128x128xbf16, #tpu.memory_space<vmem>>, vector<1x128x128xbf16>
    %47 = vector.shape_cast %46 : vector<1x128x128xbf16> to vector<128x128xbf16>
    %cst_15 = arith.constant dense<0.000000e+00> : vector<256x128xf32>
    %48 = tpu.matmul %41, %47, %cst_15 {dimension_numbers = #tpu.dot_dimension_numbers<[1], [0], [0], [1], [0, 0, 1, 1], [], []>} : vector<256x128xbf16>, vector<128x128xbf16>, vector<256x128xf32> -> vector<256x128xf32>
    %c1 = arith.constant 1 : index
    %c0_16 = arith.constant 0 : index
    %c0_17 = arith.constant 0 : index
    %49 = vector.load %arg2[%c1, %c0_16, %c0_17] : memref<3x128x128xbf16, #tpu.memory_space<vmem>>, vector<1x128x128xbf16>
    %50 = vector.shape_cast %49 : vector<1x128x128xbf16> to vector<128x128xbf16>
    %cst_18 = arith.constant dense<0.000000e+00> : vector<256x128xf32>
    %51 = tpu.matmul %45, %50, %cst_18 {dimension_numbers = #tpu.dot_dimension_numbers<[1], [0], [0], [1], [0, 0, 1, 1], [], []>} : vector<256x128xbf16>, vector<128x128xbf16>, vector<256x128xf32> -> vector<256x128xf32>
    %52 = arith.addf %48, %51 : vector<256x128xf32>
    %c2 = arith.constant 2 : index
    %c0_19 = arith.constant 0 : index
    %c0_20 = arith.constant 0 : index
    %53 = vector.load %arg2[%c2, %c0_19, %c0_20] : memref<3x128x128xbf16, #tpu.memory_space<vmem>>, vector<1x128x128xbf16>
    %54 = vector.shape_cast %53 : vector<1x128x128xbf16> to vector<128x128xbf16>
    %cst_21 = arith.constant dense<0.000000e+00> : vector<256x128xf32>
    %55 = tpu.matmul %44, %54, %cst_21 {dimension_numbers = #tpu.dot_dimension_numbers<[1], [0], [0], [1], [0, 0, 1, 1], [], []>} : vector<256x128xbf16>, vector<128x128xbf16>, vector<256x128xf32> -> vector<256x128xf32>
    %56 = arith.addf %52, %55 : vector<256x128xf32>
    %cst_22 = arith.constant dense<0.000000e+00> : vector<128xf32>
    %57 = vector.multi_reduction <add>, %56, %cst_22 [0] : vector<256x128xf32> to vector<128xf32>
    %58 = vector.shape_cast %57 : vector<128xf32> to vector<1x128xf32>
    %cst_23 = arith.constant 2.560000e+02 : f32
    %59 = vector.broadcast %cst_23 : f32 to vector<1x128xf32>
    %60 = arith.divf %58, %59 : vector<1x128xf32>
    %61 = arith.mulf %56, %56 : vector<256x128xf32>
    %cst_24 = arith.constant dense<0.000000e+00> : vector<128xf32>
    %62 = vector.multi_reduction <add>, %61, %cst_24 [0] : vector<256x128xf32> to vector<128xf32>
    %63 = vector.shape_cast %62 : vector<128xf32> to vector<1x128xf32>
    %cst_25 = arith.constant 2.560000e+02 : f32
    %64 = vector.broadcast %cst_25 : f32 to vector<1x128xf32>
    %65 = arith.divf %63, %64 : vector<1x128xf32>
    %66 = arith.mulf %60, %60 : vector<1x128xf32>
    %67 = arith.subf %65, %66 : vector<1x128xf32>
    %cst_26 = arith.constant 9.99999974E-6 : f32
    %68 = vector.broadcast %cst_26 : f32 to vector<1x128xf32>
    %69 = arith.addf %67, %68 : vector<1x128xf32>
    %70 = math.rsqrt %69 : vector<1x128xf32>
    %71 = arith.mulf %70, %3 : vector<1x128xf32>
    %72 = vector.broadcast %60 : vector<1x128xf32> to vector<256x128xf32>
    %73 = arith.subf %56, %72 : vector<256x128xf32>
    %74 = vector.broadcast %71 : vector<1x128xf32> to vector<256x128xf32>
    %75 = arith.mulf %73, %74 : vector<256x128xf32>
    %76 = vector.broadcast %4 : vector<1x128xf32> to vector<256x128xf32>
    %77 = arith.addf %75, %76 : vector<256x128xf32>
    %cst_27 = arith.constant dense<0.000000e+00> : vector<128xf32>
    %78 = vector.multi_reduction <add>, %11, %cst_27 [0] : vector<256x128xf32> to vector<128xf32>
    %79 = vector.shape_cast %78 : vector<128xf32> to vector<1x128xf32>
    %cst_28 = arith.constant 2.560000e+02 : f32
    %80 = vector.broadcast %cst_28 : f32 to vector<1x128xf32>
    %81 = arith.divf %79, %80 : vector<1x128xf32>
    %82 = arith.mulf %11, %11 : vector<256x128xf32>
    %cst_29 = arith.constant dense<0.000000e+00> : vector<128xf32>
    %83 = vector.multi_reduction <add>, %82, %cst_29 [0] : vector<256x128xf32> to vector<128xf32>
    %84 = vector.shape_cast %83 : vector<128xf32> to vector<1x128xf32>
    %cst_30 = arith.constant 2.560000e+02 : f32
    %85 = vector.broadcast %cst_30 : f32 to vector<1x128xf32>
    %86 = arith.divf %84, %85 : vector<1x128xf32>
    %87 = arith.mulf %81, %81 : vector<1x128xf32>
    %88 = arith.subf %86, %87 : vector<1x128xf32>
    %cst_31 = arith.constant 9.99999974E-6 : f32
    %89 = vector.broadcast %cst_31 : f32 to vector<1x128xf32>
    %90 = arith.addf %88, %89 : vector<1x128xf32>
    %91 = math.rsqrt %90 : vector<1x128xf32>
    %92 = arith.mulf %91, %5 : vector<1x128xf32>
    %93 = vector.broadcast %81 : vector<1x128xf32> to vector<256x128xf32>
    %94 = arith.subf %11, %93 : vector<256x128xf32>
    %95 = vector.broadcast %92 : vector<1x128xf32> to vector<256x128xf32>
    %96 = arith.mulf %94, %95 : vector<256x128xf32>
    %97 = vector.broadcast %6 : vector<1x128xf32> to vector<256x128xf32>
    %98 = arith.addf %96, %97 : vector<256x128xf32>
    %99 = arith.addf %77, %98 : vector<256x128xf32>
    %cst_32 = arith.constant 2.000000e-01 : f32
    %100 = vector.broadcast %cst_32 : f32 to vector<256x128xf32>
    %101 = arith.mulf %100, %99 : vector<256x128xf32>
    %102 = arith.maximumf %99, %101 : vector<256x128xf32>
    %c0_33 = arith.constant 0 : index
    %c0_34 = arith.constant 0 : index
    %103 = vector.load %arg4[%c0_33, %c0_34] : memref<256x128xf32, #tpu.memory_space<vmem>>, vector<256x128xf32>
    tpu.vector_store %arg4[%c0_33, %c0_34], %102 {strides = array<i32>} : memref<256x128xf32, #tpu.memory_space<vmem>>, vector<256x128xf32>,
    return
  }
}

</mosaic_0001>

<bundles_post_ra>
// kernel: resxblock_pallas.1
= control target key start
LH: loop header
LB: loop body
LE: loop exit
PB: predicated region body
PF: predicated region fallthrough
CT: control target
= control target key end

     0   :  { %vm190_vm0 = vcmask 1045504   ;;  %vm141_vm1 = vcmask 97280   ;;  %vm1050_vm6 = vcmask 1040384   ;;  %vm1051_vm7 = vsmask.f32 256  ;;  %s4959_s1 = inlined_call_operand.vmem [shape: bf16[12,256], index: 1, kind: input, shape index: {}]   ;;  %s4960_s0 = inlined_call_operand.vmem [shape: bf16[256,12], index: 0, kind: input, shape index: {}]   ;;  %s4961_s2 = inlined_call_operand.vmem [shape: bf16[3,128,128], index: 2, kind: input, shape index: {}]   ;;  %s4962_s3 = inlined_call_operand.vmem [shape: f32[8,128], index: 3, kind: input, shape index: {}]   ;;  %s4963_s4 = inlined_call_operand.vmem [shape: f32[256,128], index: 4, kind: output, shape index: {}]  }
   0x1   :  { %v2571_v0 = vld [vmem:[%s4959_s1] sm:$0xf]  ;;  %v2754_v1 = vld [vmem:[%s4959_s1 + $0x4] sm:$0x30]  ;;  %v2743_v8 = vld [vmem:[%s4960_s0 + $0x30] sm:$0xff]  ;;  %vm1181_vm8 = vcmask 1043456  }
   0x2   :  { %v2572_v2 = vor.u32 %v2754_v1, %v2571_v0  ;;  %v2737_v4 = vld [vmem:[%s4960_s0] sm:$0xff]  ;;  %v2742_v5 = vld [vmem:[%s4960_s0 + $0x28] sm:$0xff]  ;;  %v2859_v9 = vld [vmem:[%s4960_s0 + $0x50] sm:$0xff]  ;;  %vm1182_vm9 = vsmask.f32 3328 }
   0x3   :  { %v2844_v6 = vld [vmem:[%s4960_s0 + $0x60] sm:$0xff]  ;;  %v2738_v7 = vld [vmem:[%s4960_s0 + $0x8] sm:$0xff]  ;;  %v2739_v11 = vld [vmem:[%s4960_s0 + $0x10] sm:$0xff] }
   0x4   :  { %v192_v3 = vsel %vm190_vm0, %v2572_v2, 0  ;;  %v2864_v10 = vld [vmem:[%s4960_s0 + $0x68] sm:$0xff]  ;;  %v2876_v12 = vld [vmem:[%s4960_s0 + $0x38] sm:$0xff]  ;;  %v2753_v13 = vld [vmem:[%s4959_s1 + $0x4] sm:$0xf] }
   0x5   :  { %204 = vmatpush.bf16.msra.mxu0 %v192_v3  ;;  %2779 = vmatpush.bf16.msra.mxu1 %v192_v3  ;;  %v2573_v14 = vld [vmem:[%s4959_s1 + $0x8] sm:$0x30]  ;;  %v2890_v15 = vld [vmem:[%s4960_s0 + $0x58] sm:$0xff]  ;;  %v2895_v17 = vld [vmem:[%s4960_s0 + $0x70] sm:$0xff] }
   0x6   :  { %2781 = vmatpush.bf16.msra.mxu3 %v192_v3  ;;  %2780 = vmatpush.bf16.msra.mxu2 %v192_v3  ;;  %v2576_v16 = vor.u32 %v2753_v13, %v2573_v14  ;;  %v2740_v19 = vld [vmem:[%s4960_s0 + $0x18] sm:$0xff]  ;;  %v2908_v20 = vld [vmem:[%s4960_s0 + $0x40] sm:$0xff]  ;;  %v2926_v23 = vld [vmem:[%s4960_s0 + $0x48] sm:$0xff] }
   0x7   :  { %v2916_v21 = vld [vmem:[%s4960_s0 + $0x78] sm:$0xff]  ;;  %v2741_v22 = vld [vmem:[%s4960_s0 + $0x20] sm:$0xff]  ;;  %vm3401_vm10 = vmand %vm1050_vm6, %vm1051_vm7 }
   0x8   :  { %2577 = vmatmul.msk.bf16.vlgmr.msra.gmra.mxu0 %vm141_vm1, %v2737_v4  ;;  %2582 = vmatmul.msk.bf16.vlgmr.msra.gmra.mxu1 %vm141_vm1, %v2742_v5  ;;  %v195_v18 = vsel %vm190_vm0, %v2576_v16, 0  ;;  %vm3409_vm11 = vmand %vm1181_vm8, %vm1182_vm9 }
   0x9   :  { %2589 = vmatmul.msk.bf16.vlgmr.msra.gmra.mxu3 %vm141_vm1, %v2844_v6  ;;  %2587 = vmatmul.msk.bf16.vlgmr.msra.gmra.mxu2 %vm141_vm1, %v2859_v9 }
   0xa   :  { %293 = vmatpush.bf16.msrb.mxu1 %v195_v18 }
  0x18   :  { %2578 = vmatmul.msk.bf16.gmra.mxu0 %vm141_vm1, %v2738_v7  ;;  %2583 = vmatmul.msk.bf16.gmra.mxu1 %vm141_vm1, %v2743_v8 }
  0x19   :  { %2590 = vmatmul.msk.bf16.gmra.mxu3 %vm141_vm1, %v2864_v10  ;;  %2588 = vmatmul.msk.bf16.gmra.mxu2 %vm141_vm1, %v2890_v15 }
  0x28   :  { %2579 = vmatmul.msk.bf16.gmra.mxu0 %vm141_vm1, %v2739_v11  ;;  %2584 = vmatmul.msk.bf16.gmra.mxu1 %vm141_vm1, %v2876_v12 }
  0x29   :  { %2591 = vmatmul.msk.bf16.gmra.mxu3 %vm141_vm1, %v2895_v17 }
  0x38   :  { %2580 = vmatmul.msk.bf16.gmra.mxu0 %vm141_vm1, %v2740_v19  ;;  %2585 = vmatmul.msk.bf16.gmra.mxu1 %vm141_vm1, %v2908_v20 }
  0x39   :  { %2592 = vmatmul.msk.bf16.gmra.mxu3 %vm141_vm1, %v2916_v21 }
  0x48   :  { %2581 = vmatmul.msk.bf16.gmra.mxu0 %vm141_vm1, %v2741_v22  ;;  %2586 = vmatmul.msk.bf16.gmra.mxu1 %vm141_vm1, %v2926_v23 }
  0x58   :  { %2593 = vmatmul.msk.bf16.vlgmr.msrb.gmra.mxu1 %vm141_vm1, %v2737_v4 }
  0x68   :  { %2594 = vmatmul.msk.bf16.gmra.mxu1 %vm141_vm1, %v2738_v7 }
  0x78   :  { %2595 = vmatmul.msk.bf16.gmra.mxu1 %vm141_vm1, %v2739_v11 }
  0x85   :  { %v2934_v24 = vpop.f32.mrf.mxu0  ;;  %v2936_v25 = vpop.f32.mrf.mxu1 }
  0x86   :  { %v420_v41 = vmul.f32 %v2934_v24, %v2934_v24  ;;  %v430_v13 = vmul.f32 %v2936_v25, %v2936_v25 }
  0x88   :  { %2596 = vmatmul.msk.bf16.gmra.mxu1 %vm141_vm1, %v2740_v19 }
  0x8c   :  { %v2959_v35 = vpop.f32.mrf.mxu3  ;;  %v3001_v62 = vpop.f32.mrf.mxu2 }
  0x8d   :  { %v2939_v26 = vpop.f32.mrf.mxu0  ;;  %v2941_v27 = vpop.f32.mrf.mxu1 }
  0x8e   :  { %v421_v39 = vmul.f32 %v2939_v26, %v2939_v26  ;;  %v375_v42 = vadd.f32 %v2939_v26, %v2934_v24  ;;  %v431_v18 = vmul.f32 %v2941_v27, %v2941_v27 }
  0x90   :  { %v452_v45 = vadd.f32 %v421_v39, %v420_v41 }
  0x94   :  { %v2966_v38 = vpop.f32.mrf.mxu3  ;;  %v3022_v39 = vpop.f32.mrf.mxu2 }
  0x95   :  { %v2943_v28 = vpop.f32.mrf.mxu0  ;;  %v2946_v29 = vpop.f32.mrf.mxu1 }
  0x96   :  { %v422_v43 = vmul.f32 %v2943_v28, %v2943_v28  ;;  %v376_v44 = vadd.f32 %v375_v42, %v2943_v28  ;;  %v432_v41 = vmul.f32 %v2946_v29, %v2946_v29 }
  0x98   :  { %2597 = vmatmul.msk.bf16.gmra.mxu1 %vm141_vm1, %v2741_v22  ;;  %v453_v47 = vadd.f32 %v452_v45, %v422_v43 }
  0x9c   :  { %v2991_v55 = vpop.f32.mrf.mxu3 }
  0x9d   :  { %v2948_v30 = vpop.f32.mrf.mxu0  ;;  %v2950_v31 = vpop.f32.mrf.mxu1 }
  0x9e   :  { %v423_v46 = vmul.f32 %v2948_v30, %v2948_v30  ;;  %v377_v48 = vadd.f32 %v376_v44, %v2948_v30  ;;  %v433_v44 = vmul.f32 %v2950_v31, %v2950_v31 }
  0xa0   :  { %v454_v52 = vadd.f32 %v453_v47, %v423_v46 }
  0xa5   :  { %v2952_v32 = vpop.f32.mrf.mxu0  ;;  %v2957_v34 = vpop.f32.mrf.mxu1 }
  0xa6   :  { %v424_v49 = vmul.f32 %v2952_v32, %v2952_v32  ;;  %v378_v51 = vadd.f32 %v377_v48, %v2952_v32  ;;  %v434_v48 = vmul.f32 %v2957_v34, %v2957_v34 }
  0xa8   :  { %2598 = vmatmul.msk.bf16.gmra.mxu1 %vm141_vm1, %v2742_v5  ;;  %v455_v56 = vadd.f32 %v454_v52, %v424_v49 }
  0xad   :  { %v2955_v33 = vpop.f32.mrf.mxu0  ;;  %v2964_v37 = vpop.f32.mrf.mxu1 }
  0xae   :  { %v425_v53 = vmul.f32 %v2955_v33, %v2955_v33  ;;  %v379_v57 = vadd.f32 %v378_v51, %v2955_v33 }
  0xb0   :  { %v456_v60 = vadd.f32 %v455_v56, %v425_v53  ;;  %v435_v53 = vmul.f32 %v2964_v37, %v2964_v37 }
  0xb5   :  { %v2961_v36 = vpop.f32.mrf.mxu0  ;;  %v2984_v50 = vpop.f32.mrf.mxu1 }
  0xb6   :  { %v426_v58 = vmul.f32 %v2961_v36, %v2961_v36  ;;  %v380_v59 = vadd.f32 %v379_v57, %v2961_v36 }
  0xb8   :  { %2599 = vmatmul.msk.bf16.gmra.mxu1 %vm141_vm1, %v2743_v8  ;;  %v457_v63 = vadd.f32 %v456_v60, %v426_v58  ;;  %v436_v58 = vmul.f32 %v2984_v50, %v2984_v50 }
  0xbd   :  { %v2970_v40 = vpop.f32.mrf.mxu0  ;;  %v3007_v4 = vpop.f32.mrf.mxu1 }
  0xbe   :  { %v427_v61 = vmul.f32 %v2970_v40, %v2970_v40  ;;  %v381_v0 = vadd.f32 %v380_v59, %v2970_v40 }
  0xc0   :  { %v458_v3 = vadd.f32 %v457_v63, %v427_v61  ;;  %v3045_v61 = vpop.f32.mrf.mxu2  ;;  %v437_v63 = vmul.f32 %v3007_v4, %v3007_v4 }
  0xc5   :  { %v2989_v54 = vpop.f32.mrf.mxu0  ;;  %v3030_v47 = vpop.f32.mrf.mxu1 }
  0xc6   :  { %v428_v1 = vmul.f32 %v2989_v54, %v2989_v54  ;;  %v382_v2 = vadd.f32 %v381_v0, %v2989_v54 }
  0xc8   :  { %2600 = vmatmul.msk.bf16.gmra.mxu1 %vm141_vm1, %v2876_v12  ;;  %v459_v7 = vadd.f32 %v458_v3, %v428_v1  ;;  %v3014_v12 = vpop.f32.mrf.mxu3  ;;  %v438_v1 = vmul.f32 %v3030_v47, %v3030_v47 }
  0xcd   :  { %v3009_v5 = vpop.f32.mrf.mxu0 }
  0xce   :  { %v383_v8 = vadd.f32 %v382_v2, %v3009_v5  ;;  %v429_v11 = vmul.f32 %v3009_v5, %v3009_v5 }
  0xd0   :  { %v384_v14 = vadd.f32 %v383_v8, %v2936_v25  ;;  %v460_v16 = vadd.f32 %v459_v7, %v429_v11  ;;  %v3037_v52 = vpop.f32.mrf.mxu3  ;;  %v3053_v7 = vpop.f32.mrf.mxu1 }
  0xd1   :  { %v439_v11 = vmul.f32 %v3053_v7, %v3053_v7 }
  0xd2   :  { %v385_v19 = vadd.f32 %v384_v14, %v2941_v27  ;;  %v461_v22 = vadd.f32 %v460_v16, %v430_v13  ;;  %v440_v16 = vmul.f32 %v3001_v62, %v3001_v62 }
  0xd4   :  { %v386_v42 = vadd.f32 %v385_v19, %v2946_v29  ;;  %v462_v43 = vadd.f32 %v461_v22, %v431_v18  ;;  %v441_v22 = vmul.f32 %v3022_v39, %v3022_v39 }
  0xd6   :  { %v387_v45 = vadd.f32 %v386_v42, %v2950_v31  ;;  %v463_v46 = vadd.f32 %v462_v43, %v432_v41  ;;  %v3066_v43 = vpop.f32.mrf.mxu2 }
  0xd8   :  { %v464_v49 = vadd.f32 %v463_v46, %v433_v44  ;;  %v388_v51 = vadd.f32 %v387_v45, %v2957_v34  ;;  %2601 = vmatmul.msk.bf16.gmra.mxu1 %vm141_vm1, %v2908_v20  ;;  %v3058_v14 = vpop.f32.mrf.mxu3  ;;  %v442_v45 = vmul.f32 %v3045_v61, %v3045_v61 }
  0xda   :  { %v389_v56 = vadd.f32 %v388_v51, %v2964_v37  ;;  %v465_v57 = vadd.f32 %v464_v49, %v434_v48  ;;  %v443_v51 = vmul.f32 %v3066_v43, %v3066_v43 }
  0xdc   :  { %v390_v59 = vadd.f32 %v389_v56, %v2984_v50  ;;  %v466_v60 = vadd.f32 %v465_v57, %v435_v53  ;;  %v444_v53 = vmul.f32 %v2959_v35, %v2959_v35 }
  0xde   :  { %v391_v20 = vadd.f32 %v390_v59, %v3007_v4  ;;  %v467_v0 = vadd.f32 %v466_v60, %v436_v58  ;;  %v2800_v58 = vmov 256.0   ;;  %v445_v60 = vmul.f32 %v2966_v38, %v2966_v38 }
  0xdf   :  { %2791 = vrcp.f32 %v2800_v58 }
  0xe0   :  { %v392_v2 = vadd.f32 %v391_v20, %v3030_v47  ;;  %v468_v3 = vadd.f32 %v467_v0, %v437_v63  ;;  %v3079_v59 = vpop.f32.mrf.mxu3  ;;  %v446_v20 = vmul.f32 %v2991_v55, %v2991_v55 }
  0xe2   :  { %v393_v8 = vadd.f32 %v392_v2, %v3053_v7  ;;  %v469_v13 = vadd.f32 %v468_v3, %v438_v1  ;;  %v447_v3 = vmul.f32 %v3014_v12, %v3014_v12 }
  0xe4   :  { %v470_v18 = vadd.f32 %v469_v13, %v439_v11  ;;  %v394_v19 = vadd.f32 %v393_v8, %v3001_v62  ;;  %v448_v13 = vmul.f32 %v3037_v52, %v3037_v52 }
  0xe5   :  { %v2792_v2 = vpop.eup %2791 }
  0xe6   :  { %v395_v41 = vadd.f32 %v394_v19, %v3022_v39  ;;  %v471_v42 = vadd.f32 %v470_v18, %v440_v16  ;;  %v413_v19 = vmul.f32 256.0, %v2792_v2  ;;  %vm417_vm2 = vweird.f32 %v2792_v2 }
  0xe8   :  { %v396_v44 = vadd.f32 %v395_v41, %v3045_v61  ;;  %v472_v46 = vadd.f32 %v471_v42, %v441_v22  ;;  %2602 = vmatmul.msk.bf16.gmra.mxu1 %vm141_vm1, %v2926_v23  ;;  %v449_v22 = vmul.f32 %v3058_v14, %v3058_v14 }
  0xea   :  { %v473_v48 = vadd.f32 %v472_v46, %v442_v45  ;;  %v397_v49 = vadd.f32 %v396_v44, %v3066_v43  ;;  %v3096_v44 = vpop.f32.mrf.mxu3  ;;  %v450_v46 = vmul.f32 %v3079_v59, %v3079_v59 }
  0xec   :  { %v398_v56 = vadd.f32 %v397_v49, %v2959_v35  ;;  %v474_v57 = vadd.f32 %v473_v48, %v443_v51  ;;  %v414_v49 = vsub.f32 1.0, %v413_v19  ;;  %v2768_v19 = vld [vmem:[%s4961_s2 + $0x68] sm:$0xff] }
  0xee   :  { %v399_v23 = vadd.f32 %v398_v56, %v2966_v38  ;;  %v475_v63 = vadd.f32 %v474_v57, %v444_v53  ;;  %v451_v56 = vmul.f32 %v3096_v44, %v3096_v44 }
  0xf0   :  { %v476_v0 = vadd.f32 %v475_v63, %v445_v60  ;;  %v400_v1 = vadd.f32 %v399_v23, %v2991_v55  ;;  %v2770_v60 = vld [vmem:[%s4961_s2 + $0x78] sm:$0xff]  ;;  %v415_v23 = vmul.f32 %v2792_v2, %v414_v49 }
  0xf1   :  { %1329 = vmatpush.bf16.msrb.mxu2 %v2770_v60  ;;  %v2766_v60 = vld [vmem:[%s4961_s2 + $0x58] sm:$0xff] }
  0xf2   :  { %v401_v8 = vadd.f32 %v400_v1, %v3014_v12  ;;  %v477_v11 = vadd.f32 %v476_v0, %v446_v20 }
  0xf4   :  { %v402_v16 = vadd.f32 %v401_v8, %v3037_v52  ;;  %v478_v18 = vadd.f32 %v477_v11, %v447_v3  ;;  %v416_v3 = vadd.f32 %v2792_v2, %v415_v23  ;;  %v3112_v8 = vpop.f32.mrf.mxu1 }
  0xf5   :  { %5012 = vst [vmem:[#allocation2_spill] sm:$0xff] %v3112_v8 }
  0xf6   :  { %v403_v41 = vadd.f32 %v402_v16, %v3058_v14  ;;  %v479_v42 = vadd.f32 %v478_v18, %v448_v13 }
  0xf8   :  { %v404_v45 = vadd.f32 %v403_v41, %v3079_v59  ;;  %v480_v48 = vadd.f32 %v479_v42, %v449_v22  ;;  %2603 = vmatmul.msk.bf16.gmra.mxu1 %vm141_vm1, %v2859_v9  ;;  %v2769_v9 = vld [vmem:[%s4961_s2 + $0x70] sm:$0xff]  ;;  %v3117_v22 = vsel %vm417_vm2, %v2792_v2, %v416_v3  ;;  %v2767_v2 = vld [vmem:[%s4961_s2 + $0x60] sm:$0xff]  ;;  %v2764_v3 = vld [vmem:[%s4961_s2 + $0x48] sm:$0xff] }
  0xf9   :  { %1330 = vmatpush.bf16.msrb.mxu2 %v2769_v9  ;;  %5013 = vst [vmem:[#allocation3_spill] sm:$0xff] %v3117_v22  ;;  %v3165_v9 = vld [vmem:[%s4961_s2 + $0xa0] sm:$0xff] }
  0xfa   :  { %v481_v51 = vadd.f32 %v480_v48, %v450_v46  ;;  %v405_v53 = vadd.f32 %v404_v45, %v3096_v44  ;;  %v2762_v45 = vld [vmem:[%s4961_s2 + $0x38] sm:$0xff] }
  0xfb   :  { %v2778_v46 = vld [vmem:[%s4961_s2 + $0xb8] sm:$0xff]  ;;  %1562 = vmatpush.bf16.msrb.mxu3 %v2762_v45  ;;  %v2757_v45 = vld [vmem:[%s4961_s2 + $0x10] sm:$0xff] }
  0xfc   :  { %v406_v57 = vrot.slane %v405_v53, 4  ;;  %v482_v58 = vadd.f32 %v481_v51, %v451_v56  ;;  %1812 = vmatpush.bf16.msrb.mxu0 %v2778_v46  ;;  %v2761_v56 = vld [vmem:[%s4961_s2 + $0x30] sm:$0xff] }
  0xfd   :  { %1331 = vmatpush.bf16.msrb.mxu2 %v2768_v19 }
  0xfe   :  { %v407_v63 = vadd.f32 %v406_v57, %v405_v53  ;;  %v483_v20 = vrot.slane %v482_v58, 4  ;;  %v3142_v57 = vpop.f32.mrf.mxu1 }
  0xff   :  { %5014 = vst [vmem:[#allocation4_spill] sm:$0xff] %v3142_v57  ;;  %1563 = vmatpush.bf16.msrb.mxu3 %v2761_v56  ;;  %v2756_v56 = vld [vmem:[%s4961_s2 + $0x8] sm:$0xff] }
 0x100   :  { %v408_v0 = vrot.slane %v407_v63, 2  ;;  %v484_v1 = vadd.f32 %v483_v20, %v482_v58  ;;  %v3153_v20 = vld [vmem:[%s4961_s2 + $0xa8] sm:$0xff] }
 0x101   :  { %1332 = vmatpush.bf16.msrb.mxu2 %v2767_v2  ;;  %v3193_v2 = vld [vmem:[%s4961_s2 + $0x90] sm:$0xff] }
 0x102   :  { %v409_v11 = vadd.f32 %v408_v0, %v407_v63  ;;  %v485_v13 = vrot.slane %v484_v1, 2  ;;  %v2760_v63 = vld [vmem:[%s4961_s2 + $0x28] sm:$0xff]  ;;  %v2765_v0 = vld [vmem:[%s4961_s2 + $0x50] sm:$0xff] }
 0x103   :  { %1564 = vmatpush.bf16.msrb.mxu3 %v2760_v63 }
 0x104   :  { %v410_v16 = vrot.slane %v409_v11, 1  ;;  %v486_v18 = vadd.f32 %v485_v13, %v484_v1  ;;  %v2759_v1 = vld [vmem:[%s4961_s2 + $0x20] sm:$0xff] }
 0x105   :  { %1333 = vmatpush.bf16.msrb.mxu2 %v2766_v60 }
 0x106   :  { %v411_v41 = vadd.f32 %v410_v16, %v409_v11  ;;  %v487_v42 = vrot.slane %v486_v18, 1  ;;  %v2758_v11 = vld [vmem:[%s4961_s2 + $0x18] sm:$0xff]  ;;  %v3173_v16 = vpop.f32.mrf.mxu1 }
 0x107   :  { %1565 = vmatpush.bf16.msrb.mxu3 %v2759_v1  ;;  %5015 = vst [vmem:[#allocation5_spill] sm:$0xff] %v3173_v16 }
 0x108   :  { %v3126_v48 = vmul.f32 %v3117_v22, %v411_v41  ;;  %v488_v49 = vadd.f32 %v487_v42, %v486_v18  ;;  %2604 = vmatmul.msk.bf16.gmra.mxu1 %vm141_vm1, %v2890_v15  ;;  %v2777_v15 = vld [vmem:[%s4961_s2 + $0xb0] sm:$0xff]  ;;  %v3179_v18 = vld [vmem:[%s4961_s2 + $0x98] sm:$0xff]  ;;  %v2763_v41 = vld [vmem:[%s4961_s2 + $0x40] sm:$0xff] }
 0x109   :  { %1813 = vmatpush.bf16.msrb.mxu0 %v2777_v15  ;;  %1334 = vmatpush.bf16.msrb.mxu2 %v2765_v0  ;;  %v3215_v0 = vld [vmem:[%s4961_s2 + $0x88] sm:$0xff] }
 0x10a   :  { %v489_v51 = vmul.f32 %v488_v49, %v3117_v22  ;;  %v490_v53 = vmul.f32 %v3126_v48, %v3126_v48  ;;  %v504_v60 = vsub.f32 %v2934_v24, %v3126_v48  ;;  %v505_v63 = vsub.f32 %v2939_v26, %v3126_v48 }
 0x10b   :  { %1566 = vmatpush.bf16.msrb.mxu3 %v2758_v11  ;;  %v508_v24 = vsub.f32 %v2952_v32, %v3126_v48  ;;  %v509_v26 = vsub.f32 %v2955_v33, %v3126_v48  ;;  %v513_v11 = vsub.f32 %v3009_v5, %v3126_v48  ;;  %v515_v32 = vsub.f32 %v2941_v27, %v3126_v48 }
 0x10c   :  { %v491_v58 = vsub.f32 %v489_v51, %v490_v53  ;;  %v18_v51 = vld [vmem:[%s4962_s3] sm:$0xff]  ;;  %v520_v27 = vsub.f32 %v2984_v50, %v3126_v48 }
 0x10d   :  { %1814 = vmatpush.bf16.msrb.mxu0 %v3153_v20  ;;  %1335 = vmatpush.bf16.msrb.mxu2 %v2764_v3  ;;  %v3198_v53 = vperm.slane %v18_v51, 1 }
 0x10e   :  { %v492_v23 = vadd.f32 1e-05, %v491_v58  ;;  %v535_v58 = vsub.f32 %v3096_v44, %v3126_v48  ;;  %v507_v44 = vsub.f32 %v2948_v30, %v3126_v48  ;;  %v3221_v3 = vpop.f32.mrf.mxu1 }
 0x10f   :  { %1567 = vmatpush.bf16.msrb.mxu3 %v2757_v45  ;;  %5016 = vst [vmem:[#allocation6_spill] sm:$0xff] %v3221_v3  ;;  %v526_v45 = vsub.f32 %v3045_v61, %v3126_v48 }
 0x110   :  { %2793 = vrsqrt.f32 %v492_v23  ;;  %vm499_vm4 = vweird.f32 %v492_v23 }
 0x111   :  { %1815 = vmatpush.bf16.msrb.mxu0 %v3165_v9  ;;  %1336 = vmatpush.bf16.msrb.mxu2 %v2763_v41  ;;  %v517_v41 = vsub.f32 %v2950_v31, %v3126_v48  ;;  %v521_v31 = vsub.f32 %v3007_v4, %v3126_v48  ;;  %v527_v4 = vsub.f32 %v3066_v43, %v3126_v48 }
 0x112   :  { %v532_v43 = vsub.f32 %v3037_v52, %v3126_v48 }
 0x113   :  { %1568 = vmatpush.bf16.msrb.mxu3 %v2756_v56 }
 0x115   :  { %1816 = vmatpush.bf16.msrb.mxu0 %v3179_v18  ;;  %2782 = vmatpush.bf16.msra.mxu2 %v2778_v46  ;;  %v506_v46 = vsub.f32 %v2943_v28, %v3126_v48  ;;  %v512_v28 = vsub.f32 %v2989_v54, %v3126_v48  ;;  %v2755_v54 = vld [vmem:[%s4961_s2] sm:$0xff] }
 0x116   :  { %v2794_v13 = vpop.eup %2793 }
 0x117   :  { %v494_v19 = vmul.f32 %v2794_v13, %v492_v23  ;;  %vm500_vm3 = vweird.f32 %v2794_v13  ;;  %v514_v23 = vsub.f32 %v2936_v25, %v3126_v48  ;;  %v518_v25 = vsub.f32 %v2957_v34, %v3126_v48  ;;  %1569 = vmatpush.bf16.msrb.mxu3 %v2755_v54 }
 0x118   :  { %2605 = vmatmul.msk.bf16.gmra.mxu1 %vm141_vm1, %v2844_v6  ;;  %vm501_vm5 = vmor %vm499_vm4, %vm500_vm3  ;;  %v523_v34 = vsub.f32 %v3053_v7, %v3126_v48  ;;  %v529_v7 = vsub.f32 %v2966_v38, %v3126_v48 }
 0x119   :  { %v495_v42 = vmul.f32 %v2794_v13, %v494_v19  ;;  %1817 = vmatpush.bf16.msrb.mxu0 %v3193_v2  ;;  %2783 = vmatpush.bf16.msra.mxu2 %v2777_v15  ;;  %v516_v19 = vsub.f32 %v2946_v29, %v3126_v48  ;;  %v519_v15 = vsub.f32 %v2964_v37, %v3126_v48  ;;  %v3251_v29 = vld [vmem:[%s4961_s2 + $0x80] sm:$0xff] }
 0x11a   :  { %v524_v37 = vsub.f32 %v3001_v62, %v3126_v48  ;;  %v530_v62 = vsub.f32 %v2991_v55, %v3126_v48 }
 0x11b   :  { %v496_v49 = vmul.f32 0.5, %v495_v42  ;;  %v525_v42 = vsub.f32 %v3022_v39, %v3126_v48  ;;  %v531_v39 = vsub.f32 %v3014_v12, %v3126_v48 }
 0x11d   :  { %v497_v6 = vsub.f32 1.5, %v496_v49  ;;  %1818 = vmatpush.bf16.msrb.mxu0 %v3215_v0  ;;  %2784 = vmatpush.bf16.msra.mxu2 %v3153_v20  ;;  %v533_v20 = vsub.f32 %v3058_v14, %v3126_v48 }
 0x11f   :  { %v498_v1 = vmul.f32 %v2794_v13, %v497_v6 }
 0x121   :  { %v502_v30 = vsel %vm501_vm5, %v2794_v13, %v498_v1  ;;  %v522_v13 = vsub.f32 %v3030_v47, %v3126_v48  ;;  %v528_v47 = vsub.f32 %v2959_v35, %v3126_v48  ;;  %v534_v35 = vsub.f32 %v3079_v59, %v3126_v48  ;;  %1819 = vmatpush.bf16.msrb.mxu0 %v3251_v29 }
 0x122   :  { %v503_v5 = vmul.f32 %v502_v30, %v18_v51  ;;  %2785 = vmatpush.bf16.msra.mxu2 %v3165_v9 }
 0x124   :  { %v3261_v50 = vperm.slane %v503_v5, 0 }
 0x126   :  { %v3279_v61 = vmul.f32 %v3261_v50, %v535_v58  ;;  %v537_v38 = vmul.f32 %v3261_v50, %v504_v60  ;;  %v538_v55 = vmul.f32 %v3261_v50, %v505_v63  ;;  %v539_v12 = vmul.f32 %v3261_v50, %v506_v46  ;;  %v3317_v63 = vpop.f32.mrf.mxu1  ;;  %2786 = vmatpush.bf16.msra.mxu2 %v3179_v18 }
 0x127   :  { %v540_v49 = vmul.f32 %v3261_v50, %v507_v44  ;;  %v541_v51 = vmul.f32 %v3261_v50, %v508_v24  ;;  %v3294_v52 = vmul.f32 %v3261_v50, %v512_v28  ;;  %v3297_v14 = vmul.f32 %v3261_v50, %v513_v11  ;;  %5017 = vst [vmem:[#allocation7_spill] sm:$0xff] %v3317_v63 }
 0x128   :  { %v3300_v59 = vmul.f32 %v3261_v50, %v514_v23  ;;  %2606 = vmatmul.msk.bf16.gmra.mxu1 %vm141_vm1, %v2864_v10  ;;  %v3305_v6 = vmul.f32 %v3261_v50, %v515_v32  ;;  %v3308_v56 = vmul.f32 %v3261_v50, %v516_v19  ;;  %v3311_v58 = vmul.f32 %v3261_v50, %v517_v41 }
 0x129   :  { %v3314_v60 = vmul.f32 %v3261_v50, %v518_v25  ;;  %v3320_v46 = vmul.f32 %v3261_v50, %v519_v15  ;;  %v3323_v10 = vmul.f32 %v3261_v50, %v520_v27  ;;  %v3326_v1 = vmul.f32 %v3261_v50, %v521_v31 }
 0x12a   :  { %v3329_v44 = vmul.f32 %v3261_v50, %v522_v13  ;;  %v3332_v24 = vmul.f32 %v3261_v50, %v523_v34  ;;  %v3335_v28 = vmul.f32 %v3261_v50, %v524_v37  ;;  %v3338_v9 = vmul.f32 %v3261_v50, %v525_v42  ;;  %2787 = vmatpush.bf16.msra.mxu2 %v3193_v2 }
 0x12b   :  { %v3341_v11 = vmul.f32 %v3261_v50, %v526_v45  ;;  %v3344_v23 = vmul.f32 %v3261_v50, %v527_v4  ;;  %v3347_v30 = vmul.f32 %v3261_v50, %v528_v47  ;;  %v3350_v32 = vmul.f32 %v3261_v50, %v529_v7 }
 0x12c   :  { %v3353_v19 = vmul.f32 %v3261_v50, %v530_v62  ;;  %v3356_v41 = vmul.f32 %v3261_v50, %v531_v39  ;;  %v3359_v54 = vmul.f32 %v3261_v50, %v532_v43  ;;  %v3362_v5 = vmul.f32 %v3261_v50, %v533_v20 }
 0x12d   :  { %v3365_v25 = vmul.f32 %v3261_v50, %v534_v35  ;;  %v542_v15 = vmul.f32 %v3261_v50, %v509_v26  ;;  %v570_v27 = vadd.f32 %v3198_v53, %v537_v38  ;;  %v571_v31 = vadd.f32 %v3198_v53, %v538_v55 }
 0x12e   :  { %v572_v34 = vadd.f32 %v3198_v53, %v539_v12  ;;  %v573_v37 = vadd.f32 %v3198_v53, %v540_v49  ;;  %v574_v42 = vadd.f32 %v3198_v53, %v541_v51  ;;  %v3379_v26 = vpop.f32.mrf.mxu1  ;;  %2788 = vmatpush.bf16.msra.mxu2 %v3215_v0  ;;  %v510_v2 = vsub.f32 %v2961_v36, %v3126_v48 }
 0x12f   :  { %v602_v13 = vmul.f32 0.2, %v570_v27  ;;  %v603_v45 = vmul.f32 0.2, %v571_v31  ;;  %v575_v4 = vadd.f32 %v3198_v53, %v542_v15  ;;  %5018 = vst [vmem:[#allocation8_spill] sm:$0xff] %v3379_v26  ;;  %v511_v12 = vsub.f32 %v2970_v40, %v3126_v48 }
 0x130   :  { %v604_v33 = vmul.f32 0.2, %v572_v34  ;;  %v605_v47 = vmul.f32 0.2, %v573_v37  ;;  %v606_v20 = vmul.f32 0.2, %v574_v42 }
 0x131   :  { %v634_v18 = vmax.f32 %v570_v27, %v602_v13  ;;  %v635_v7 = vmax.f32 %v571_v31, %v603_v45  ;;  %v607_v35 = vmul.f32 0.2, %v575_v4 }
 0x132   :  { %v636_v39 = vmax.f32 %v572_v34, %v604_v33  ;;  %v637_v43 = vmax.f32 %v573_v37, %v605_v47  ;;  %v638_v13 = vmax.f32 %v574_v42, %v606_v20  ;;  %2789 = vmatpush.bf16.msra.mxu2 %v3251_v29  ;;  %v544_v29 = vmul.f32 %v3261_v50, %v511_v12 }
 0x133   :  { %v666_v62 = vpack.c.bf16 %v634_v18, %v634_v18  ;;  %v667_v38 = vpack.c.bf16 %v635_v7, %v635_v7  ;;  %v639_v34 = vmax.f32 %v575_v4, %v607_v35  ;;  %v543_v4 = vmul.f32 %v3261_v50, %v510_v2 }
 0x134   :  { %v668_v49 = vpack.c.bf16 %v636_v39, %v636_v39  ;;  %v669_v51 = vpack.c.bf16 %v637_v43, %v637_v43 }
 0x135   :  { %v730_v55 = vunpack.c.l.b16 %v666_v62  ;;  %v731_v15 = vunpack.c.l.b16 %v667_v38  ;;  %v671_v50 = vpack.c.bf16 %v639_v34, %v639_v34 }
 0x136   :  { %v3388_v31 = vunpack.c.l.b16 %v668_v49  ;;  %v3390_v0 = vunpack.c.l.b16 %v669_v51  ;;  %v3405_v43 = vpop.f32.mrf.mxu1 }
 0x137   :  { %v762_v27 = vpack.c.b16 %v730_v55, %v730_v55  ;;  %v763_v36 = vpack.c.b16 %v731_v15, %v731_v15  ;;  %v1249_v48 = vpack.c.b16 %v731_v15, %v730_v55  ;;  %5021 = vst [vmem:[#allocation9_spill] sm:$0xff] %v3405_v43  ;;  %v670_v55 = vpack.c.bf16 %v638_v13, %v638_v13 }
 0x138   :  { %2607 = vmatmul.msk.bf16.gmra.mxu1 %vm141_vm1, %v2895_v17  ;;  %v764_v45 = vpack.c.b16 %v3388_v31, %v3388_v31  ;;  %v765_v17 = vpack.c.b16 %v3390_v0, %v3390_v0  ;;  %v576_v43 = vadd.f32 %v3198_v53, %v543_v4  ;;  %v577_v4 = vadd.f32 %v3198_v53, %v544_v29 }
 0x139   :  { %v795_v37 = vshrl.u32 %v762_v27, 16  ;;  %v798_v40 = vshll.u32 %v762_v27, 16  ;;  %v802_v18 = vshrl.u32 %v763_v36, 16  ;;  %v805_v33 = vshll.u32 %v763_v36, 16  ;;  %1337 = vmatmul.bf16.vlgmr.msrb.gmra.mxu2 %v1249_v48 }
 0x13a   :  { %v809_v62 = vshrl.u32 %v764_v45, 16  ;;  %v816_v39 = vshrl.u32 %v765_v17, 16  ;;  %v812_v49 = vshll.u32 %v764_v45, 16  ;;  %v819_v36 = vshll.u32 %v765_v17, 16 }
 0x13b   :  { %v797_v47 = vrot.slane %v795_v37, 7  ;;  %v1085_v42 = vrot.slane %v798_v40, 1  ;;  %v804_v35 = vrot.slane %v802_v18, 7  ;;  %v1087_v12 = vrot.slane %v805_v33, 1 }
 0x13c   :  { %v811_v51 = vrot.slane %v809_v62, 7  ;;  %v818_v48 = vrot.slane %v816_v39, 7  ;;  %v3422_v45 = vunpack.c.l.b16 %v671_v50 }
 0x13d   :  { %v800_v20 = vor.u32 %v798_v40, %v797_v47  ;;  %v1086_v2 = vor.u32 %v1085_v42, %v795_v37  ;;  %v807_v15 = vor.u32 %v805_v33, %v804_v35  ;;  %v1088_v47 = vor.u32 %v1087_v12, %v802_v18 }
 0x13e   :  { %v3420_v37 = vunpack.c.l.b16 %v670_v55  ;;  %v814_v42 = vor.u32 %v812_v49, %v811_v51  ;;  %v821_v35 = vor.u32 %v819_v36, %v818_v48  ;;  %v1091_v12 = vrot.slane %v819_v36, 1 }
 0x13f   :  { %v1053_v27 = vsel %vm3401_vm10, 0, %v800_v20  ;;  %v1184_v22 = vsel %vm3409_vm11, %v1086_v2, 0  ;;  %v1054_v13 = vsel %vm3401_vm10, 0, %v807_v15  ;;  %v1185_v17 = vsel %vm3409_vm11, %v1088_v47, 0  ;;  %v3435_v15 = vpop.f32.mrf.mxu1 }
 0x140   :  { %v1450_v40 = vunpack.c.l.b16 %v1053_v27  ;;  %v1700_v34 = vunpack.c.l.b16 %v1184_v22  ;;  %v1451_v33 = vunpack.c.l.b16 %v1054_v13  ;;  %v1089_v20 = vrot.slane %v812_v49, 1  ;;  %5024 = vst [vmem:[#allocation10_spill] sm:$0xff] %v3435_v15 }
 0x141   :  { %v1701_v18 = vunpack.c.l.b16 %v1185_v17  ;;  %v608_v27 = vmul.f32 0.2, %v576_v43  ;;  %v766_v22 = vpack.c.b16 %v3420_v37, %v3420_v37  ;;  %v1250_v55 = vpack.c.b16 %v3390_v0, %v3388_v31 }
 0x142   :  { %v1482_v2 = vpack.c.b16 %v1451_v33, %v1450_v40  ;;  %v1055_v50 = vsel %vm3401_vm10, 0, %v814_v42  ;;  %v1090_v51 = vor.u32 %v1089_v20, %v809_v62  ;;  %v767_v49 = vpack.c.b16 %v3422_v45, %v3422_v45 }
 0x143   :  { %v1732_v26 = vpack.c.b16 %v1701_v18, %v1700_v34  ;;  %v1056_v29 = vsel %vm3401_vm10, 0, %v821_v35  ;;  %v1092_v36 = vor.u32 %v1091_v12, %v816_v39  ;;  %v823_v48 = vshrl.u32 %v766_v22, 16 }
 0x144   :  { %1570 = vmatmul.bf16.vlgmr.msrb.gmra.mxu3 %v1482_v2  ;;  %v826_v40 = vshll.u32 %v766_v22, 16  ;;  %v830_v31 = vshrl.u32 %v767_v49, 16  ;;  %v833_v0 = vshll.u32 %v767_v49, 16  ;;  %v609_v47 = vmul.f32 0.2, %v577_v4 }
 0x145   :  { %1820 = vmatmul.bf16.vlgmr.msrb.gmra.mxu0 %v1732_v26  ;;  %v640_v13 = vmax.f32 %v576_v43, %v608_v27  ;;  %v1452_v62 = vunpack.c.l.b16 %v1055_v50  ;;  %v825_v34 = vrot.slane %v823_v48, 7  ;;  %v578_v17 = vadd.f32 %v3198_v53, %v3294_v52 }
 0x146   :  { %v1093_v33 = vrot.slane %v826_v40, 1  ;;  %v832_v26 = vrot.slane %v830_v31, 7  ;;  %v1095_v42 = vrot.slane %v833_v0, 1  ;;  %v641_v20 = vmax.f32 %v577_v4, %v609_v47 }
 0x147   :  { %v1453_v18 = vunpack.c.l.b16 %v1056_v29  ;;  %v1186_v39 = vsel %vm3409_vm11, %v1090_v51, 0  ;;  %v1187_v35 = vsel %vm3409_vm11, %v1092_v36, 0  ;;  %v828_v12 = vor.u32 %v826_v40, %v825_v34 }
 0x148   :  { %2608 = vmatmul.msk.bf16.gmra.mxu1 %vm141_vm1, %v2916_v21  ;;  %v672_v21 = vpack.c.bf16 %v640_v13, %v640_v13  ;;  %v673_v43 = vpack.c.bf16 %v641_v20, %v641_v20  ;;  %v579_v27 = vadd.f32 %v3198_v53, %v3297_v14  ;;  %v610_v52 = vmul.f32 0.2, %v578_v17 }
 0x149   :  { %1342 = vmatmul.bf16.gmra.mxu2 %v1250_v55  ;;  %v835_v22 = vor.u32 %v833_v0, %v832_v26  ;;  %v1094_v50 = vor.u32 %v1093_v33, %v823_v48  ;;  %v1096_v4 = vor.u32 %v1095_v42, %v830_v31  ;;  %v1483_v49 = vpack.c.b16 %v1453_v18, %v1452_v62 }
 0x14a   :  { %v3447_v2 = vunpack.c.l.b16 %v672_v21  ;;  %v1702_v55 = vunpack.c.l.b16 %v1186_v39  ;;  %v1703_v29 = vunpack.c.l.b16 %v1187_v35  ;;  %v3451_v47 = vunpack.c.l.b16 %v673_v43 }
 0x14b   :  { %v1057_v51 = vsel %vm3401_vm10, 0, %v828_v12  ;;  %v611_v40 = vmul.f32 0.2, %v579_v27  ;;  %v642_v13 = vmax.f32 %v578_v17, %v610_v52  ;;  %v1058_v14 = vsel %vm3401_vm10, 0, %v835_v22 }
 0x14c   :  { %v768_v36 = vpack.c.b16 %v3447_v2, %v3447_v2  ;;  %v1188_v48 = vsel %vm3409_vm11, %v1094_v50, 0  ;;  %v1189_v31 = vsel %vm3409_vm11, %v1096_v4, 0  ;;  %v769_v0 = vpack.c.b16 %v3451_v47, %v3451_v47 }
 0x14d   :  { %v643_v33 = vmax.f32 %v579_v27, %v611_v40  ;;  %v674_v26 = vpack.c.bf16 %v642_v13, %v642_v13  ;;  %v1733_v42 = vpack.c.b16 %v1703_v29, %v1702_v55  ;;  %v3465_v20 = vunpack.c.l.b16 %v1057_v51 }
 0x14e   :  { %v837_v62 = vshrl.u32 %v768_v36, 16  ;;  %v840_v34 = vshll.u32 %v768_v36, 16  ;;  %v844_v17 = vshrl.u32 %v769_v0, 16  ;;  %v580_v21 = vadd.f32 %v3198_v53, %v3300_v59 }
 0x14f   :  { %v3469_v18 = vunpack.c.l.b16 %v1188_v48  ;;  %v847_v39 = vshll.u32 %v769_v0, 16  ;;  %v675_v35 = vpack.c.bf16 %v643_v33, %v643_v33  ;;  %v3471_v12 = vunpack.c.l.b16 %v674_v26 }
 0x150   :  { %v3473_v43 = vunpack.c.l.b16 %v1058_v14  ;;  %v3475_v52 = vunpack.c.l.b16 %v1189_v31  ;;  %v839_v22 = vrot.slane %v837_v62, 7  ;;  %v1097_v27 = vrot.slane %v840_v34, 1 }
 0x151   :  { %v846_v50 = vrot.slane %v844_v17, 7  ;;  %v3477_v4 = vunpack.c.l.b16 %v675_v35  ;;  %v770_v55 = vpack.c.b16 %v3471_v12, %v3471_v12  ;;  %v581_v59 = vadd.f32 %v3198_v53, %v3305_v6 }
 0x152   :  { %v612_v29 = vmul.f32 0.2, %v580_v21  ;;  %v1251_v51 = vpack.c.b16 %v3422_v45, %v3420_v37  ;;  %v1099_v36 = vrot.slane %v847_v39, 1  ;;  %v1734_v14 = vpack.c.b16 %v3475_v52, %v3469_v18 }
 0x153   :  { %v771_v40 = vpack.c.b16 %v3477_v4, %v3477_v4  ;;  %v851_v13 = vshrl.u32 %v770_v55, 16  ;;  %v842_v48 = vor.u32 %v840_v34, %v839_v22  ;;  %v1098_v31 = vor.u32 %v1097_v27, %v837_v62 }
 0x154   :  { %1575 = vmatmul.bf16.gmra.mxu3 %v1483_v49  ;;  %v1484_v49 = vpack.c.b16 %v3473_v43, %v3465_v20  ;;  %v3491_v0 = vor.u32 %v847_v39, %v846_v50  ;;  %v854_v6 = vshll.u32 %v770_v55, 16  ;;  %v613_v26 = vmul.f32 0.2, %v581_v59 }
 0x155   :  { %1825 = vmatmul.bf16.gmra.mxu0 %v1733_v42  ;;  %v858_v33 = vshrl.u32 %v771_v40, 16  ;;  %v861_v37 = vshll.u32 %v771_v40, 16  ;;  %v853_v42 = vrot.slane %v851_v13, 7  ;;  %v644_v35 = vmax.f32 %v580_v21, %v612_v29 }
 0x156   :  { %v1252_v20 = vpack.c.b16 %v3451_v47, %v3447_v2  ;;  %v3497_v43 = vor.u32 %v1099_v36, %v844_v17  ;;  %v1101_v34 = vrot.slane %v854_v6, 1  ;;  %v1059_v62 = vsel %vm3401_vm10, 0, %v842_v48 }
 0x157   :  { %v860_v18 = vrot.slane %v858_v33, 7  ;;  %v1190_v39 = vsel %vm3409_vm11, %v1098_v31, 0  ;;  %v856_v52 = vor.u32 %v854_v6, %v853_v42  ;;  %v1103_v22 = vrot.slane %v861_v37, 1 }
 0x158   :  { %v1102_v50 = vor.u32 %v1101_v34, %v851_v13  ;;  %v645_v55 = vmax.f32 %v581_v59, %v613_v26  ;;  %v1060_v2 = vsel %vm3401_vm10, 0, %v3491_v0  ;;  %v582_v21 = vadd.f32 %v3198_v53, %v3308_v56 }
 0x159   :  { %1347 = vmatmul.bf16.gmra.mxu2 %v1251_v51  ;;  %v863_v27 = vor.u32 %v861_v37, %v860_v18  ;;  %v676_v51 = vpack.c.bf16 %v644_v35, %v644_v35  ;;  %v1061_v47 = vsel %vm3401_vm10, 0, %v856_v52  ;;  %v1104_v17 = vor.u32 %v1103_v22, %v858_v33 }
 0x15a   :  { %v3512_v36 = vunpack.c.l.b16 %v1061_v47  ;;  %v1192_v59 = vsel %vm3409_vm11, %v1102_v50, 0  ;;  %v677_v40 = vpack.c.bf16 %v645_v55, %v645_v55  ;;  %v583_v33 = vadd.f32 %v3198_v53, %v3311_v58 }
 0x15b   :  { %v1062_v29 = vsel %vm3401_vm10, 0, %v863_v27  ;;  %v1193_v48 = vsel %vm3409_vm11, %v1104_v17, 0  ;;  %v3520_v31 = vunpack.c.l.b16 %v1192_v59  ;;  %v3522_v0 = vunpack.c.l.b16 %v676_v51 }
 0x15c   :  { %v3516_v13 = vunpack.c.l.b16 %v1062_v29  ;;  %v3524_v6 = vunpack.c.l.b16 %v1193_v48  ;;  %v3526_v56 = vunpack.c.l.b16 %v677_v40  ;;  %v614_v26 = vmul.f32 0.2, %v582_v21 }
 0x15d   :  { %v3530_v37 = vunpack.c.l.b16 %v1059_v62  ;;  %v772_v35 = vpack.c.b16 %v3522_v0, %v3522_v0  ;;  %v584_v18 = vadd.f32 %v3198_v53, %v3314_v60  ;;  %v615_v62 = vmul.f32 0.2, %v583_v33 }
 0x15e   :  { %v773_v52 = vpack.c.b16 %v3526_v56, %v3526_v56  ;;  %v1191_v22 = vsel %vm3409_vm11, %v3497_v43, 0  ;;  %v585_v55 = vadd.f32 %v3198_v53, %v3320_v46  ;;  %v646_v47 = vmax.f32 %v582_v21, %v614_v26 }
 0x15f   :  { %v865_v27 = vshrl.u32 %v772_v35, 16  ;;  %v868_v50 = vshll.u32 %v772_v35, 16  ;;  %v647_v17 = vmax.f32 %v583_v33, %v615_v62  ;;  %v3549_v29 = vunpack.c.l.b16 %v1190_v39 }
 0x160   :  { %v872_v60 = vshrl.u32 %v773_v52, 16  ;;  %v875_v51 = vshll.u32 %v773_v52, 16  ;;  %v616_v48 = vmul.f32 0.2, %v584_v18  ;;  %v678_v42 = vpack.c.bf16 %v646_v47, %v646_v47 }
 0x161   :  { %v867_v59 = vrot.slane %v865_v27, 7  ;;  %v1105_v40 = vrot.slane %v868_v50, 1  ;;  %v679_v43 = vpack.c.bf16 %v647_v17, %v647_v17  ;;  %v617_v15 = vmul.f32 0.2, %v585_v55 }
 0x162   :  { %v874_v58 = vrot.slane %v872_v60, 7  ;;  %v1107_v34 = vrot.slane %v875_v51, 1  ;;  %v648_v63 = vmax.f32 %v584_v18, %v616_v48  ;;  %v3551_v3 = vunpack.c.l.b16 %v678_v42 }
 0x163   :  { %v870_v45 = vor.u32 %v868_v50, %v867_v59  ;;  %v1106_v35 = vor.u32 %v1105_v40, %v865_v27  ;;  %v3553_v21 = vunpack.c.l.b16 %v679_v43  ;;  %v649_v33 = vmax.f32 %v585_v55, %v617_v15 }
 0x164   :  { %1580 = vmatmul.bf16.gmra.mxu3 %v1484_v49  ;;  %v877_v46 = vor.u32 %v875_v51, %v874_v58  ;;  %v1108_v49 = vor.u32 %v1107_v34, %v872_v60  ;;  %v680_v26 = vpack.c.bf16 %v648_v63, %v648_v63  ;;  %v1457_v34 = vunpack.c.l.b16 %v1060_v2 }
 0x165   :  { %1830 = vmatmul.bf16.gmra.mxu0 %v1734_v14  ;;  %v1063_v14 = vsel %vm3401_vm10, 0, %v870_v45  ;;  %v1194_v39 = vsel %vm3409_vm11, %v1106_v35, 0  ;;  %v774_v15 = vpack.c.b16 %v3551_v3, %v3551_v3  ;;  %v775_v63 = vpack.c.b16 %v3553_v21, %v3553_v21 }
 0x166   :  { %v1064_v52 = vsel %vm3401_vm10, 0, %v877_v46  ;;  %v3561_v62 = vunpack.c.l.b16 %v1063_v14  ;;  %v1195_v42 = vsel %vm3409_vm11, %v1108_v49, 0  ;;  %v3565_v18 = vunpack.c.l.b16 %v1194_v39 }
 0x167   :  { %v3567_v58 = vunpack.c.l.b16 %v1064_v52  ;;  %v3569_v45 = vunpack.c.l.b16 %v1195_v42  ;;  %v681_v50 = vpack.c.bf16 %v649_v33, %v649_v33  ;;  %v879_v60 = vshrl.u32 %v774_v15, 16 }
 0x168   :  { %v882_v51 = vshll.u32 %v774_v15, 16  ;;  %v886_v47 = vshrl.u32 %v775_v63, 16  ;;  %v889_v17 = vshll.u32 %v775_v63, 16  ;;  %v1485_v59 = vpack.c.b16 %v1457_v34, %v3530_v37 }
 0x169   :  { %1352 = vmatmul.bf16.gmra.mxu2 %v1252_v20  ;;  %v1707_v20 = vunpack.c.l.b16 %v1191_v22  ;;  %v1487_v55 = vpack.c.b16 %v3567_v58, %v3561_v62  ;;  %v3581_v22 = vunpack.c.l.b16 %v680_v26  ;;  %v3585_v48 = vunpack.c.l.b16 %v681_v50 }
 0x16a   :  { %v881_v35 = vrot.slane %v879_v60, 7  ;;  %v888_v46 = vrot.slane %v886_v47, 7  ;;  %v1109_v49 = vrot.slane %v882_v51, 1  ;;  %v1111_v14 = vrot.slane %v889_v17, 1 }
 0x16b   :  { %v1735_v40 = vpack.c.b16 %v1707_v20, %v3549_v29  ;;  %v776_v43 = vpack.c.b16 %v3581_v22, %v3581_v22  ;;  %v777_v39 = vpack.c.b16 %v3585_v48, %v3585_v48  ;;  %v586_v63 = vadd.f32 %v3198_v53, %v3323_v10 }
 0x16c   :  { %v884_v37 = vor.u32 %v882_v51, %v881_v35  ;;  %v891_v42 = vor.u32 %v889_v17, %v888_v46  ;;  %v1110_v29 = vor.u32 %v1109_v49, %v879_v60  ;;  %v1112_v34 = vor.u32 %v1111_v14, %v886_v47 }
 0x16d   :  { %v893_v33 = vshrl.u32 %v776_v43, 16  ;;  %v896_v26 = vshll.u32 %v776_v43, 16  ;;  %v900_v20 = vshrl.u32 %v777_v39, 16  ;;  %v903_v15 = vshll.u32 %v777_v39, 16 }
 0x16e   :  { %v587_v50 = vadd.f32 %v3198_v53, %v3326_v1  ;;  %v1065_v27 = vsel %vm3401_vm10, 0, %v884_v37  ;;  %v1066_v43 = vsel %vm3401_vm10, 0, %v891_v42  ;;  %v1196_v51 = vsel %vm3409_vm11, %v1110_v29, 0 }
 0x16f   :  { %v1197_v60 = vsel %vm3409_vm11, %v1112_v34, 0  ;;  %v3605_v47 = vunpack.c.l.b16 %v1065_v27  ;;  %v3607_v10 = vunpack.c.l.b16 %v1066_v43  ;;  %v3609_v17 = vunpack.c.l.b16 %v1196_v51 }
 0x170   :  { %v3611_v1 = vunpack.c.l.b16 %v1197_v60  ;;  %v1115_v35 = vrot.slane %v903_v15, 1  ;;  %v895_v46 = vrot.slane %v893_v33, 7  ;;  %v902_v14 = vrot.slane %v900_v20, 7 }
 0x171   :  { %v618_v39 = vmul.f32 0.2, %v586_v63  ;;  %v619_v37 = vmul.f32 0.2, %v587_v50  ;;  %v5025_v34 = vpack.c.b16 %v3477_v4, %v3471_v12  ;;  %v588_v52 = vadd.f32 %v3198_v53, %v3329_v44 }
 0x172   :  { %v898_v27 = vor.u32 %v896_v26, %v895_v46  ;;  %v1116_v29 = vor.u32 %v1115_v35, %v900_v20  ;;  %v905_v43 = vor.u32 %v903_v15, %v902_v14  ;;  %v590_v12 = vadd.f32 %v3198_v53, %v3335_v28 }
 0x173   :  { %v650_v51 = vmax.f32 %v586_v63, %v618_v39  ;;  %v651_v60 = vmax.f32 %v587_v50, %v619_v37  ;;  %v620_v35 = vmul.f32 0.2, %v588_v52 }
 0x174   :  { %1585 = vmatmul.bf16.gmra.mxu3 %v1485_v59  ;;  %v1113_v59 = vrot.slane %v896_v26, 1  ;;  %v1067_v49 = vsel %vm3401_vm10, 0, %v898_v27  ;;  %v589_v26 = vadd.f32 %v3198_v53, %v3332_v24  ;;  %v1068_v4 = vsel %vm3401_vm10, 0, %v905_v43 }
 0x175   :  { %1835 = vmatmul.bf16.gmra.mxu0 %v1735_v40  ;;  %v3634_v20 = vunpack.c.l.b16 %v1067_v49  ;;  %v3636_v44 = vunpack.c.l.b16 %v1068_v4  ;;  %v682_v50 = vpack.c.bf16 %v650_v51, %v650_v51  ;;  %v591_v49 = vadd.f32 %v3198_v53, %v3338_v9 }
 0x176   :  { %v1114_v42 = vor.u32 %v1113_v59, %v893_v33  ;;  %v1199_v33 = vsel %vm3409_vm11, %v1116_v29, 0  ;;  %v683_v59 = vpack.c.bf16 %v651_v60, %v651_v60  ;;  %v621_v46 = vmul.f32 0.2, %v589_v26 }
 0x177   :  { %v3640_v63 = vunpack.c.l.b16 %v1199_v33  ;;  %v3646_v14 = vunpack.c.l.b16 %v682_v50  ;;  %v622_v27 = vmul.f32 0.2, %v590_v12  ;;  %v623_v29 = vmul.f32 0.2, %v591_v49 }
 0x178   :  { %v1198_v2 = vsel %vm3409_vm11, %v1114_v42, 0  ;;  %v3650_v39 = vunpack.c.l.b16 %v683_v59  ;;  %v653_v37 = vmax.f32 %v589_v26, %v621_v46 }
 0x179   :  { %1357 = vmatmul.bf16.gmra.mxu2 %v5025_v34  ;;  %v3638_v15 = vunpack.c.l.b16 %v1198_v2  ;;  %v652_v2 = vmax.f32 %v588_v52, %v620_v35  ;;  %v778_v42 = vpack.c.b16 %v3646_v14, %v3646_v14  ;;  %v654_v9 = vmax.f32 %v590_v12, %v622_v27 }
 0x17a   :  { %v779_v34 = vpack.c.b16 %v3650_v39, %v3650_v39  ;;  %v685_v60 = vpack.c.bf16 %v653_v37, %v653_v37  ;;  %v3660_v52 = vadd.f32 %v3198_v53, %v3341_v11  ;;  %v655_v59 = vmax.f32 %v591_v49, %v623_v29 }
 0x17b   :  { %v684_v51 = vpack.c.bf16 %v652_v2, %v652_v2  ;;  %v907_v33 = vshrl.u32 %v778_v42, 16  ;;  %v910_v4 = vshll.u32 %v778_v42, 16  ;;  %v5026_v35 = vpack.c.b16 %v3516_v13, %v3512_v36 }
 0x17c   :  { %v914_v26 = vshrl.u32 %v779_v34, 16  ;;  %v917_v50 = vshll.u32 %v779_v34, 16  ;;  %v3667_v2 = vunpack.c.l.b16 %v685_v60  ;;  %v5027_v12 = vpack.c.b16 %v3524_v6, %v3520_v31 }
 0x17d   :  { %v909_v46 = vrot.slane %v907_v33, 7  ;;  %v1117_v28 = vrot.slane %v910_v4, 1  ;;  %v3665_v24 = vunpack.c.l.b16 %v684_v51  ;;  %v686_v27 = vpack.c.bf16 %v654_v9, %v654_v9 }
 0x17e   :  { %v916_v37 = vrot.slane %v914_v26, 7  ;;  %v1119_v11 = vrot.slane %v917_v50, 1  ;;  %v3674_v49 = vadd.f32 %v3198_v53, %v3344_v23  ;;  %v781_v29 = vpack.c.b16 %v3667_v2, %v3667_v2 }
 0x17f   :  { %v912_v42 = vor.u32 %v910_v4, %v909_v46  ;;  %v1118_v36 = vor.u32 %v1117_v28, %v907_v33  ;;  %v780_v13 = vpack.c.b16 %v3665_v24, %v3665_v24  ;;  %v687_v6 = vpack.c.bf16 %v655_v59, %v655_v59 }
 0x180   :  { %v919_v34 = vor.u32 %v917_v50, %v916_v37  ;;  %v1120_v51 = vor.u32 %v1119_v11, %v914_v26  ;;  %v5028_v33 = vpack.c.b16 %v3526_v56, %v3522_v0  ;;  %v928_v37 = vshrl.u32 %v781_v29, 16 }
 0x181   :  { %v1069_v60 = vsel %vm3401_vm10, 0, %v912_v42  ;;  %v1200_v23 = vsel %vm3409_vm11, %v1118_v36, 0  ;;  %v921_v4 = vshrl.u32 %v780_v13, 16  ;;  %v924_v28 = vshll.u32 %v780_v13, 16 }
 0x182   :  { %v1070_v9 = vsel %vm3401_vm10, 0, %v919_v34  ;;  %v3691_v26 = vunpack.c.l.b16 %v1069_v60  ;;  %v1201_v50 = vsel %vm3409_vm11, %v1120_v51, 0  ;;  %v3695_v59 = vunpack.c.l.b16 %v1200_v23 }
 0x183   :  { %v3699_v46 = vunpack.c.l.b16 %v1201_v50  ;;  %v931_v11 = vshll.u32 %v781_v29, 16  ;;  %v1121_v42 = vrot.slane %v924_v28, 1  ;;  %v930_v36 = vrot.slane %v928_v37, 7 }
 0x184   :  { %1590 = vmatmul.bf16.gmra.mxu3 %v5026_v35  ;;  %v3697_v35 = vunpack.c.l.b16 %v1070_v9  ;;  %v3705_v60 = vunpack.c.l.b16 %v686_v27  ;;  %v624_v23 = vmul.f32 0.2, %v3660_v52  ;;  %v3710_v29 = vunpack.c.l.b16 %v687_v6 }
 0x185   :  { %1840 = vmatmul.bf16.gmra.mxu0 %v5027_v12  ;;  %v923_v12 = vrot.slane %v921_v4, 7  ;;  %v1123_v34 = vrot.slane %v931_v11, 1  ;;  %v1122_v51 = vor.u32 %v1121_v42, %v921_v4  ;;  %v625_v50 = vmul.f32 0.2, %v3674_v49 }
 0x186   :  { %v782_v27 = vpack.c.b16 %v3705_v60, %v3705_v60  ;;  %v783_v6 = vpack.c.b16 %v3710_v29, %v3710_v29 }
 0x187   :  { %v926_v13 = vor.u32 %v924_v28, %v923_v12  ;;  %v1124_v0 = vor.u32 %v1123_v34, %v928_v37  ;;  %v1202_v28 = vsel %vm3409_vm11, %v1122_v51, 0 }
 0x188   :  { %v3721_v12 = vunpack.c.l.b16 %v1202_v28  ;;  %v942_v51 = vshrl.u32 %v783_v6, 16  ;;  %v594_v28 = vadd.f32 %v3198_v53, %v3347_v30  ;;  %v5029_v30 = vpack.c.b16 %v3569_v45, %v3565_v18 }
 0x189   :  { %1362 = vmatmul.bf16.gmra.mxu2 %v5028_v33  ;;  %v933_v33 = vor.u32 %v931_v11, %v930_v36  ;;  %v1071_v9 = vsel %vm3401_vm10, 0, %v926_v13  ;;  %v1203_v37 = vsel %vm3409_vm11, %v1124_v0, 0  ;;  %v935_v36 = vshrl.u32 %v782_v27, 16 }
 0x18a   :  { %v3713_v31 = vunpack.c.l.b16 %v1071_v9  ;;  %v938_v13 = vshll.u32 %v782_v27, 16  ;;  %v3731_v34 = vunpack.c.l.b16 %v1203_v37  ;;  %v945_v9 = vshll.u32 %v783_v6, 16 }
 0x18b   :  { %v1072_v4 = vsel %vm3401_vm10, 0, %v933_v33  ;;  %v656_v33 = vmax.f32 %v3660_v52, %v624_v23  ;;  %v937_v11 = vrot.slane %v935_v36, 7  ;;  %v944_v27 = vrot.slane %v942_v51, 7 }
 0x18c   :  { %v3727_v42 = vunpack.c.l.b16 %v1072_v4  ;;  %v1125_v4 = vrot.slane %v938_v13, 1  ;;  %v1127_v37 = vrot.slane %v945_v9, 1  ;;  %v596_v52 = vadd.f32 %v3198_v53, %v3353_v19 }
 0x18d   :  { %v940_v23 = vor.u32 %v938_v13, %v937_v11  ;;  %v657_v6 = vmax.f32 %v3674_v49, %v625_v50  ;;  %v688_v56 = vpack.c.bf16 %v656_v33, %v656_v33  ;;  %v947_v43 = vor.u32 %v945_v9, %v944_v27 }
 0x18e   :  { %v1126_v62 = vor.u32 %v1125_v4, %v935_v36  ;;  %v1128_v58 = vor.u32 %v1127_v37, %v942_v51  ;;  %v626_v19 = vmul.f32 0.2, %v594_v28 }
 0x18f   :  { %v1073_v0 = vsel %vm3401_vm10, 0, %v940_v23  ;;  %v689_v40 = vpack.c.bf16 %v657_v6, %v657_v6  ;;  %v3753_v16 = vunpack.c.l.b16 %v688_v56  ;;  %v1074_v18 = vsel %vm3401_vm10, 0, %v947_v43 }
 0x190   :  { %v3757_v45 = vunpack.c.l.b16 %v1073_v0  ;;  %v1204_v49 = vsel %vm3409_vm11, %v1126_v62, 0  ;;  %v1205_v50 = vsel %vm3409_vm11, %v1128_v58, 0  ;;  %v3766_v11 = vunpack.c.l.b16 %v1074_v18 }
 0x191   :  { %v3768_v56 = vunpack.c.l.b16 %v1204_v49  ;;  %v3770_v36 = vunpack.c.l.b16 %v1205_v50  ;;  %v3772_v13 = vunpack.c.l.b16 %v689_v40  ;;  %v784_v43 = vpack.c.b16 %v3753_v16, %v3753_v16 }
 0x192   :  { %v658_v9 = vmax.f32 %v594_v28, %v626_v19  ;;  %v628_v28 = vmul.f32 0.2, %v596_v52 }
 0x193   :  { %v785_v0 = vpack.c.b16 %v3772_v13, %v3772_v13  ;;  %v949_v27 = vshrl.u32 %v784_v43, 16  ;;  %v952_v40 = vshll.u32 %v784_v43, 16 }
 0x194   :  { %1595 = vmatmul.bf16.gmra.mxu3 %v1487_v55  ;;  %v595_v55 = vadd.f32 %v3198_v53, %v3350_v32  ;;  %v5030_v32 = vpack.c.b16 %v3553_v21, %v3551_v3  ;;  %v597_v21 = vadd.f32 %v3198_v53, %v3356_v41  ;;  %v660_v41 = vmax.f32 %v596_v52, %v628_v28 }
 0x195   :  { %1845 = vmatmul.bf16.gmra.mxu0 %v5029_v30  ;;  %v690_v30 = vpack.c.bf16 %v658_v9, %v658_v9  ;;  %v956_v23 = vshrl.u32 %v785_v0, 16  ;;  %v959_v6 = vshll.u32 %v785_v0, 16  ;;  %v951_v62 = vrot.slane %v949_v27, 7 }
 0x196   :  { %v627_v51 = vmul.f32 0.2, %v595_v55  ;;  %v1129_v58 = vrot.slane %v952_v40, 1  ;;  %v629_v49 = vmul.f32 0.2, %v597_v21  ;;  %v5031_v28 = vpack.c.b16 %v3607_v10, %v3605_v47 }
 0x197   :  { %v3786_v18 = vunpack.c.l.b16 %v690_v30  ;;  %v954_v50 = vor.u32 %v952_v40, %v951_v62  ;;  %v1131_v33 = vrot.slane %v959_v6, 1 }
 0x198   :  { %v659_v37 = vmax.f32 %v595_v55, %v627_v51  ;;  %v1130_v3 = vor.u32 %v1129_v58, %v949_v27  ;;  %v661_v40 = vmax.f32 %v597_v21, %v629_v49  ;;  %v692_v27 = vpack.c.bf16 %v660_v41, %v660_v41 }
 0x199   :  { %1367 = vmatmul.bf16.gmra.mxu2 %v5030_v32  ;;  %v958_v32 = vrot.slane %v956_v23, 7  ;;  %v786_v55 = vpack.c.b16 %v3786_v18, %v3786_v18  ;;  %v1075_v9 = vsel %vm3401_vm10, 0, %v954_v50  ;;  %v1132_v0 = vor.u32 %v1131_v33, %v956_v23 }
 0x19a   :  { %v691_v19 = vpack.c.bf16 %v659_v37, %v659_v37  ;;  %v1206_v37 = vsel %vm3409_vm11, %v1130_v3, 0  ;;  %v3796_v30 = vunpack.c.l.b16 %v1075_v9  ;;  %v598_v23 = vadd.f32 %v3198_v53, %v3359_v54 }
 0x19b   :  { %v961_v51 = vor.u32 %v959_v6, %v958_v32  ;;  %v3798_v52 = vunpack.c.l.b16 %v1206_v37  ;;  %v1207_v62 = vsel %vm3409_vm11, %v1132_v0, 0  ;;  %v963_v3 = vshrl.u32 %v786_v55, 16 }
 0x19c   :  { %v3788_v43 = vunpack.c.l.b16 %v691_v19  ;;  %v5032_v21 = vpack.c.b16 %v3611_v1, %v3609_v17  ;;  %v3816_v47 = vunpack.c.l.b16 %v1207_v62  ;;  %v966_v10 = vshll.u32 %v786_v55, 16  ;;  %v3824_v1 = vpop.f32.mrf.mxu1 }
 0x19d   :  { %v1076_v6 = vsel %vm3401_vm10, 0, %v961_v51  ;;  %v965_v50 = vrot.slane %v963_v3, 7  ;;  %v693_v17 = vpack.c.bf16 %v661_v40, %v661_v40  ;;  %5033 = vst [vmem:[#allocation11_spill] sm:$0xff] %v3824_v1  ;;  %v3826_v55 = vunpack.c.l.b16 %v692_v27 }
 0x19e   :  { %v787_v33 = vpack.c.b16 %v3788_v43, %v3788_v43  ;;  %v3814_v58 = vunpack.c.l.b16 %v1076_v6  ;;  %v1133_v51 = vrot.slane %v966_v10, 1 }
 0x19f   :  { %v968_v9 = vor.u32 %v966_v10, %v965_v50  ;;  %5034 = vst [vmem:[#allocation12_spill] sm:$0xff] %v3826_v55  ;;  %v3831_v62 = vunpack.c.l.b16 %v693_v17  ;;  %v788_v40 = vpack.c.b16 %v3826_v55, %v3826_v55 }
 0x1a0   :  { %v970_v19 = vshrl.u32 %v787_v33, 16  ;;  %v973_v49 = vshll.u32 %v787_v33, 16  ;;  %v1134_v6 = vor.u32 %v1133_v51, %v963_v3  ;;  %v600_v51 = vadd.f32 %v3198_v53, %v3365_v25 }
 0x1a1   :  { %5036 = vst [vmem:[#allocation13_spill] sm:$0xff] %v3831_v62 }
 0x1a2   :  { %v972_v0 = vrot.slane %v970_v19, 7  ;;  %v1135_v37 = vrot.slane %v973_v49, 1  ;;  %v1208_v27 = vsel %vm3409_vm11, %v1134_v6, 0 }
 0x1a3   :  { %v3847_v50 = vunpack.c.l.b16 %v1208_v27 }
 0x1a4   :  { %1600 = vmatmul.bf16.gmra.mxu3 %v5031_v28  ;;  %v5035_v28 = vpack.c.b16 %v3585_v48, %v3581_v22  ;;  %v975_v33 = vor.u32 %v973_v49, %v972_v0  ;;  %v1136_v41 = vor.u32 %v1135_v37, %v970_v19  ;;  %v599_v22 = vadd.f32 %v3198_v53, %v3362_v5  ;;  %v3865_v1 = vpop.f32.mrf.mxu1 }
 0x1a5   :  { %1850 = vmatmul.bf16.gmra.mxu0 %v5032_v21  ;;  %v1077_v21 = vsel %vm3401_vm10, 0, %v968_v9  ;;  %v630_v48 = vmul.f32 0.2, %v598_v23  ;;  %v789_v19 = vpack.c.b16 %v3831_v62, %v3831_v62  ;;  %v977_v5 = vshrl.u32 %v788_v40, 16 }
 0x1a6   :  { %v3837_v10 = vunpack.c.l.b16 %v1077_v21  ;;  %v1078_v3 = vsel %vm3401_vm10, 0, %v975_v33  ;;  %v1209_v49 = vsel %vm3409_vm11, %v1136_v41, 0  ;;  %v980_v0 = vshll.u32 %v788_v40, 16 }
 0x1a7   :  { %v3853_v17 = vunpack.c.l.b16 %v1078_v3  ;;  %v3855_v9 = vunpack.c.l.b16 %v1209_v49  ;;  %v984_v37 = vshrl.u32 %v789_v19, 16  ;;  %v979_v21 = vrot.slane %v977_v5, 7 }
 0x1a8   :  { %v631_v27 = vmul.f32 0.2, %v599_v22  ;;  %v1137_v3 = vrot.slane %v980_v0, 1  ;;  %v662_v49 = vmax.f32 %v598_v23, %v630_v48  ;;  %v601_v40 = vadd.f32 %v3198_v53, %v3279_v61 }
 0x1a9   :  { %1372 = vmatmul.bf16.gmra.mxu2 %v5035_v28  ;;  %v987_v28 = vshll.u32 %v789_v19, 16  ;;  %v986_v25 = vrot.slane %v984_v37, 7  ;;  %v982_v32 = vor.u32 %v980_v0, %v979_v21  ;;  %v632_v19 = vmul.f32 0.2, %v600_v51 }
 0x1aa   :  { %v663_v4 = vmax.f32 %v599_v22, %v631_v27  ;;  %v1138_v57 = vor.u32 %v1137_v3, %v977_v5  ;;  %v694_v8 = vpack.c.bf16 %v662_v49, %v662_v49  ;;  %v5037_v62 = vpack.c.b16 %v3636_v44, %v3634_v20 }
 0x1ab   :  { %v1139_v54 = vrot.slane %v987_v28, 1  ;;  %v989_v6 = vor.u32 %v987_v28, %v986_v25  ;;  %v1079_v33 = vsel %vm3401_vm10, 0, %v982_v32  ;;  %v633_v48 = vmul.f32 0.2, %v601_v40 }
 0x1ac   :  { %v695_v55 = vpack.c.bf16 %v663_v4, %v663_v4  ;;  %v3874_v22 = vunpack.c.l.b16 %v1079_v33  ;;  %v1210_v53 = vsel %vm3409_vm11, %v1138_v57, 0  ;;  %v3889_v44 = vunpack.c.l.b16 %v694_v8  ;;  %v3908_v25 = vpop.f32.mrf.mxu1 }
 0x1ad   :  { %v1140_v41 = vor.u32 %v1139_v54, %v984_v37  ;;  %v1080_v23 = vsel %vm3401_vm10, 0, %v989_v6  ;;  %v5038_v54 = vpack.c.b16 %v3640_v63, %v3638_v15  ;;  %v3885_v32 = vunpack.c.l.b16 %v1210_v53  ;;  %5040 = vst [vmem:[#allocation14_spill] sm:$0xff] %v3908_v25 }
 0x1ae   :  { %v3883_v4 = vunpack.c.l.b16 %v1080_v23  ;;  %v664_v5 = vmax.f32 %v600_v51, %v632_v19  ;;  %v790_v15 = vpack.c.b16 %v3889_v44, %v3889_v44  ;;  %v665_v37 = vmax.f32 %v601_v40, %v633_v48 }
 0x1af   :  { %v1211_v61 = vsel %vm3409_vm11, %v1140_v41, 0 }
 0x1b0   :  { %v3887_v20 = vunpack.c.l.b16 %v1211_v61  ;;  %v1495_v57 = vpack.c.b16 %v3883_v4, %v3874_v22  ;;  %v696_v51 = vpack.c.bf16 %v664_v5, %v664_v5  ;;  %v991_v28 = vshrl.u32 %v790_v15, 16 }
 0x1b1   :  { %v994_v6 = vshll.u32 %v790_v15, 16  ;;  %v697_v21 = vpack.c.bf16 %v665_v37, %v665_v37 }
 0x1b2   :  { %v3906_v27 = vunpack.c.l.b16 %v696_v51  ;;  %v993_v49 = vrot.slane %v991_v28, 7 }
 0x1b3   :  { %v1141_v23 = vrot.slane %v994_v6, 1  ;;  %v3910_v40 = vunpack.c.l.b16 %v697_v21 }
 0x1b4   :  { %1605 = vmatmul.bf16.gmra.mxu3 %v5037_v62  ;;  %v3891_v62 = vunpack.c.l.b16 %v695_v55  ;;  %v5039_v55 = vpack.c.b16 %v3650_v39, %v3646_v14  ;;  %v792_v14 = vpack.c.b16 %v3906_v27, %v3906_v27  ;;  %v996_v39 = vor.u32 %v994_v6, %v993_v49  ;;  %v3944_v8 = vpop.f32.mrf.mxu1 }
 0x1b5   :  { %1855 = vmatmul.bf16.gmra.mxu0 %v5038_v54  ;;  %v1142_v54 = vor.u32 %v1141_v23, %v991_v28  ;;  %v793_v5 = vpack.c.b16 %v3910_v40, %v3910_v40  ;;  %5043 = vst [vmem:[#allocation15_spill] sm:$0xff] %v3944_v8 }
 0x1b6   :  { %v791_v63 = vpack.c.b16 %v3891_v62, %v3891_v62  ;;  %v1005_v15 = vshrl.u32 %v792_v14, 16 }
 0x1b7   :  { %v1212_v6 = vsel %vm3409_vm11, %v1142_v54, 0  ;;  %v1012_v23 = vshrl.u32 %v793_v5, 16 }
 0x1b8   :  { %v998_v41 = vshrl.u32 %v791_v63, 16  ;;  %v1001_v33 = vshll.u32 %v791_v63, 16  ;;  %v1008_v63 = vshll.u32 %v792_v14, 16  ;;  %v3930_v21 = vunpack.c.l.b16 %v1212_v6 }
 0x1b9   :  { %1377 = vmatmul.bf16.gmra.mxu2 %v5039_v55  ;;  %v1081_v55 = vsel %vm3401_vm10, 0, %v996_v39  ;;  %v1007_v39 = vrot.slane %v1005_v15, 7 }
 0x1ba   :  { %v1000_v19 = vrot.slane %v998_v41, 7  ;;  %v1143_v53 = vrot.slane %v1001_v33, 1  ;;  %v1145_v14 = vrot.slane %v1008_v63, 1 }
 0x1bb   :  { %v1010_v6 = vor.u32 %v1008_v63, %v1007_v39 }
 0x1bc   :  { %v1338_v3 = vpop.f32.mrf.mxu2  ;;  %v1003_v61 = vor.u32 %v1001_v33, %v1000_v19  ;;  %v1144_v48 = vor.u32 %v1143_v53, %v998_v41  ;;  %v3926_v41 = vunpack.c.l.b16 %v1081_v55  ;;  %v1015_v53 = vshll.u32 %v793_v5, 16 }
 0x1bd   :  { %v1146_v55 = vor.u32 %v1145_v14, %v1005_v15  ;;  %v5042_v5 = vpack.c.b16 %v3699_v46, %v3695_v59 }
 0x1be   :  { %v1082_v51 = vsel %vm3401_vm10, 0, %v1003_v61  ;;  %v1213_v28 = vsel %vm3409_vm11, %v1144_v48, 0  ;;  %v5041_v48 = vpack.c.b16 %v3697_v35, %v3691_v26  ;;  %v1083_v26 = vsel %vm3401_vm10, 0, %v1010_v6 }
 0x1bf   :  { %v3928_v33 = vunpack.c.l.b16 %v1082_v51  ;;  %v3932_v49 = vunpack.c.l.b16 %v1213_v28  ;;  %v1147_v51 = vrot.slane %v1015_v53, 1  ;;  %v1014_v28 = vrot.slane %v1012_v23, 7 }
 0x1c0   :  { %v1214_v61 = vsel %vm3409_vm11, %v1146_v55, 0  ;;  %v3950_v15 = vunpack.c.l.b16 %v1083_v26 }
 0x1c1   :  { %v1148_v0 = vor.u32 %v1147_v51, %v1012_v23  ;;  %v1017_v54 = vor.u32 %v1015_v53, %v1014_v28  ;;  %v3952_v63 = vunpack.c.l.b16 %v1214_v61  ;;  %v5044_v23 = vpack.c.b16 %v3667_v2, %v3665_v24  ;;  %v3971_v61 = vpop.f32.mrf.mxu1 }
 0x1c2   :  { %v1821_v19 = vpop.f32.mrf.mxu0  ;;  %5046 = vst [vmem:[#allocation17_spill] sm:$0xff] %v3971_v61  ;;  %v5048_v51 = vpack.c.b16 %v3727_v42, %v3713_v31 }
 0x1c3   :  { %v1215_v59 = vsel %vm3409_vm11, %v1148_v0, 0  ;;  %v1084_v46 = vsel %vm3401_vm10, 0, %v1017_v54 }
 0x1c4   :  { %1610 = vmatmul.bf16.gmra.mxu3 %v5041_v48  ;;  %v1340_v37 = vpop.f32.mrf.mxu2  ;;  %v3961_v53 = vunpack.c.l.b16 %v1084_v46  ;;  %v3963_v39 = vunpack.c.l.b16 %v1215_v59 }
 0x1c5   :  { %1860 = vmatmul.bf16.gmra.mxu0 %v5042_v5  ;;  %v5050_v5 = vpack.c.b16 %v3710_v29, %v3705_v60  ;;  %v5056_v60 = vpack.c.b16 %v3770_v36, %v3768_v56  ;;  %v5061_v56 = vpack.c.b16 %v3814_v58, %v3796_v30 }
 0x1c6   :  { %v1747_v38 = vpack.c.b16 %v3963_v39, %v3952_v63 }
 0x1c7   :  { %v1571_v35 = vpop.f32.mrf.mxu3 }
 0x1c8   :  { %v1572_v14 = vadd.f32 %v1571_v35, %v1338_v3  ;;  %v1497_v3 = vpack.c.b16 %v3961_v53, %v3950_v15 }
 0x1c9   :  { %1382 = vmatmul.bf16.gmra.mxu2 %v5044_v23  ;;  %v3984_v26 = vpop.f32.mrf.mxu1 }
 0x1ca   :  { %v3965_v48 = vadd.f32 %v1821_v19, %v1572_v14  ;;  %v1823_v55 = vpop.f32.mrf.mxu0  ;;  %v5049_v19 = vpack.c.b16 %v3731_v34, %v3721_v12  ;;  %5051 = vst [vmem:[#allocation19_spill] sm:$0xff] %v3984_v26  ;;  %v5055_v34 = vpack.c.b16 %v3766_v11, %v3757_v45 }
 0x1cc   :  { %5045 = vst [vmem:[#allocation16_spill] sm:$0xff] %v3965_v48  ;;  %v1343_v0 = vpop.f32.mrf.mxu2 }
 0x1cf   :  { %v1573_v7 = vpop.f32.mrf.mxu3 }
 0x1d0   :  { %v1574_v54 = vadd.f32 %v1573_v7, %v1340_v37 }
 0x1d1   :  { %v3988_v23 = vpop.f32.mrf.mxu1 }
 0x1d2   :  { %v3973_v24 = vadd.f32 %v1823_v55, %v1574_v54  ;;  %v1826_v2 = vpop.f32.mrf.mxu0  ;;  %5053 = vst [vmem:[#allocation21_spill] sm:$0xff] %v3988_v23 }
 0x1d4   :  { %5047 = vst [vmem:[#allocation18_spill] sm:$0xff] %v3973_v24  ;;  %1615 = vmatmul.bf16.gmra.mxu3 %v5048_v51  ;;  %v1345_v6 = vpop.f32.mrf.mxu2 }
 0x1d5   :  { %1865 = vmatmul.bf16.gmra.mxu0 %v5049_v19 }
 0x1d7   :  { %v1576_v28 = vpop.f32.mrf.mxu3 }
 0x1d8   :  { %v1577_v37 = vadd.f32 %v1576_v28, %v1343_v0  ;;  %v5057_v0 = vpack.c.b16 %v3772_v13, %v3753_v16  ;;  %v5062_v16 = vpack.c.b16 %v3816_v47, %v3798_v52  ;;  %v5066_v47 = vpack.c.b16 %v3853_v17, %v3837_v10 }
 0x1d9   :  { %1387 = vmatmul.bf16.gmra.mxu2 %v5050_v5  ;;  %v4003_v51 = vpop.f32.mrf.mxu1 }
 0x1da   :  { %v1828_v35 = vpop.f32.mrf.mxu0  ;;  %v3986_v14 = vadd.f32 %v1826_v2, %v1577_v37  ;;  %5059 = vst [vmem:[#allocation24_spill] sm:$0xff] %v4003_v51  ;;  %v5064_v37 = vpack.c.b16 %v3788_v43, %v3786_v18  ;;  %v5067_v18 = vpack.c.b16 %v3855_v9, %v3847_v50  ;;  %v5074_v50 = vpack.c.b16 %v3887_v20, %v3885_v32 }
 0x1dc   :  { %5052 = vst [vmem:[#allocation20_spill] sm:$0xff] %v3986_v14  ;;  %v1348_v59 = vpop.f32.mrf.mxu2 }
 0x1df   :  { %v1578_v46 = vpop.f32.mrf.mxu3 }
 0x1e0   :  { %v1579_v31 = vadd.f32 %v1578_v46, %v1345_v6 }
 0x1e1   :  { %v4013_v36 = vpop.f32.mrf.mxu1 }
 0x1e2   :  { %v1831_v42 = vpop.f32.mrf.mxu0  ;;  %v3990_v12 = vadd.f32 %v1828_v35, %v1579_v31  ;;  %5063 = vst [vmem:[#allocation26_spill] sm:$0xff] %v4013_v36 }
 0x1e4   :  { %5054 = vst [vmem:[#allocation22_spill] sm:$0xff] %v3990_v12  ;;  %1620 = vmatmul.bf16.gmra.mxu3 %v5055_v34  ;;  %v1350_v29 = vpop.f32.mrf.mxu2 }
 0x1e5   :  { %1870 = vmatmul.bf16.gmra.mxu0 %v5056_v60 }
 0x1e7   :  { %v1581_v55 = vpop.f32.mrf.mxu3 }
 0x1e8   :  { %v1582_v7 = vadd.f32 %v1581_v55, %v1348_v59  ;;  %v5069_v55 = vld [vmem:[#allocation12_spill] sm:$0xff] }
 0x1e9   :  { %1392 = vmatmul.bf16.gmra.mxu2 %v5057_v0  ;;  %v4020_v30 = vpop.f32.mrf.mxu1 }
 0x1ea   :  { %v1833_v54 = vpop.f32.mrf.mxu0  ;;  %v4001_v2 = vadd.f32 %v1831_v42, %v1582_v7  ;;  %5065 = vst [vmem:[#allocation27_spill] sm:$0xff] %v4020_v30 }
 0x1ec   :  { %5058 = vst [vmem:[#allocation23_spill] sm:$0xff] %v4001_v2  ;;  %v1353_v19 = vpop.f32.mrf.mxu2 }
 0x1ef   :  { %v1583_v6 = vpop.f32.mrf.mxu3 }
 0x1f0   :  { %v1584_v45 = vadd.f32 %v1583_v6, %v1350_v29  ;;  %v5068_v29 = vld [vmem:[#allocation13_spill] sm:$0xff] }
 0x1f1   :  { %v5070_v0 = vpack.c.b16 %v5068_v29, %v5069_v55 }
 0x1f2   :  { %v1836_v11 = vpop.f32.mrf.mxu0  ;;  %v4005_v28 = vadd.f32 %v1833_v54, %v1584_v45 }
 0x1f4   :  { %5060 = vst [vmem:[#allocation25_spill] sm:$0xff] %v4005_v28  ;;  %1625 = vmatmul.bf16.gmra.mxu3 %v5061_v56  ;;  %v1355_v13 = vpop.f32.mrf.mxu2 }
 0x1f5   :  { %1875 = vmatmul.bf16.gmra.mxu0 %v5062_v16 }
 0x1f7   :  { %v1586_v5 = vpop.f32.mrf.mxu3 }
 0x1f8   :  { %v1587_v35 = vadd.f32 %v1586_v5, %v1353_v19  ;;  %v4033_v19 = vpop.f32.mrf.mxu1  ;;  %v5076_v5 = vpack.c.b16 %v3891_v62, %v3889_v44 }
 0x1f9   :  { %1397 = vmatmul.bf16.gmra.mxu2 %v5064_v37  ;;  %5071 = vst [vmem:[#allocation13_spill] sm:$0xff] %v4033_v19  ;;  %v5077_v37 = vld [vmem:[#allocation2_spill] sm:$0xff] }
 0x1fa   :  { %v1838_v59 = vpop.f32.mrf.mxu0  ;;  %v4018_v46 = vadd.f32 %v1836_v11, %v1587_v35  ;;  %v2191_v35 = vmul.f32 %v5077_v37, %v5077_v37 }
 0x1fc   :  { %v1358_v31 = vpop.f32.mrf.mxu2 }
 0x1ff   :  { %v1588_v42 = vpop.f32.mrf.mxu3 }
 0x200   :  { %v1589_v58 = vadd.f32 %v1588_v42, %v1355_v13  ;;  %v4045_v9 = vpop.f32.mrf.mxu1 }
 0x201   :  { %5075 = vst [vmem:[#allocation29_spill] sm:$0xff] %v4045_v9 }
 0x202   :  { %v1841_v34 = vpop.f32.mrf.mxu0  ;;  %v4022_v52 = vadd.f32 %v1838_v59, %v1589_v58  ;;  %v5078_v59 = vld [vmem:[#allocation4_spill] sm:$0xff] }
 0x203   :  { %v2153_v22 = vadd.f32 %v5078_v59, %v5077_v37 }
 0x204   :  { %1630 = vmatmul.bf16.gmra.mxu3 %v5066_v47  ;;  %v1360_v43 = vpop.f32.mrf.mxu2 }
 0x205   :  { %1880 = vmatmul.bf16.gmra.mxu0 %v5067_v18 }
 0x207   :  { %v1591_v60 = vpop.f32.mrf.mxu3 }
 0x208   :  { %v1592_v7 = vadd.f32 %v1591_v60, %v1358_v31  ;;  %v2192_v31 = vmul.f32 %v5078_v59, %v5078_v59  ;;  %v4061_v62 = vpop.f32.mrf.mxu1 }
 0x209   :  { %1402 = vmatmul.bf16.gmra.mxu2 %v5070_v0  ;;  %5081 = vst [vmem:[#allocation4_spill] sm:$0xff] %v4061_v62 }
 0x20a   :  { %v1843_v54 = vpop.f32.mrf.mxu0  ;;  %v4035_v6 = vadd.f32 %v1841_v34, %v1592_v7  ;;  %v2223_v44 = vadd.f32 %v2192_v31, %v2191_v35  ;;  %v5088_v31 = vld [vmem:[#allocation8_spill] sm:$0xff] }
 0x20c   :  { %5072 = vst [vmem:[#allocation12_spill] sm:$0xff] %v4035_v6  ;;  %v1363_v45 = vpop.f32.mrf.mxu2 }
 0x20f   :  { %v1593_v11 = vpop.f32.mrf.mxu3 }
 0x210   :  { %v1594_v10 = vadd.f32 %v1593_v11, %v1360_v43  ;;  %v5082_v43 = vld [vmem:[#allocation6_spill] sm:$0xff]  ;;  %v5086_v11 = vld [vmem:[#allocation7_spill] sm:$0xff] }
 0x211   :  { %v2194_v60 = vmul.f32 %v5082_v43, %v5082_v43 }
 0x212   :  { %v1846_v17 = vpop.f32.mrf.mxu0  ;;  %v4037_v56 = vadd.f32 %v1843_v54, %v1594_v10  ;;  %v5084_v54 = vpack.c.b16 %v3928_v33, %v3926_v41  ;;  %v2196_v41 = vmul.f32 %v5088_v31, %v5088_v31 }
 0x214   :  { %5073 = vst [vmem:[#allocation28_spill] sm:$0xff] %v4037_v56  ;;  %1635 = vmatmul.bf16.gmra.mxu3 %v1495_v57  ;;  %v1365_v16 = vpop.f32.mrf.mxu2  ;;  %v5080_v57 = vld [vmem:[#allocation5_spill] sm:$0xff] }
 0x215   :  { %1885 = vmatmul.bf16.gmra.mxu0 %v5074_v50  ;;  %v2154_v42 = vadd.f32 %v2153_v22, %v5080_v57  ;;  %v2193_v58 = vmul.f32 %v5080_v57, %v5080_v57 }
 0x217   :  { %v1596_v13 = vpop.f32.mrf.mxu3  ;;  %v2224_v18 = vadd.f32 %v2223_v44, %v2193_v58  ;;  %v2155_v29 = vadd.f32 %v2154_v42, %v5082_v43 }
 0x218   :  { %v1597_v4 = vadd.f32 %v1596_v13, %v1363_v45  ;;  %v5085_v45 = vpack.c.b16 %v3932_v49, %v3930_v21  ;;  %v4083_v21 = vpop.f32.mrf.mxu1 }
 0x219   :  { %1407 = vmatmul.bf16.gmra.mxu2 %v5076_v5  ;;  %v2156_v10 = vadd.f32 %v2155_v29, %v5086_v11  ;;  %v2225_v50 = vadd.f32 %v2224_v18, %v2194_v60  ;;  %5089 = vst [vmem:[#allocation6_spill] sm:$0xff] %v4083_v21  ;;  %v5091_v18 = vld [vmem:[#allocation10_spill] sm:$0xff] }
 0x21a   :  { %v1848_v32 = vpop.f32.mrf.mxu0  ;;  %v4056_v20 = vadd.f32 %v1846_v17, %v1597_v4  ;;  %v2195_v17 = vmul.f32 %v5086_v11, %v5086_v11  ;;  %v2198_v60 = vmul.f32 %v5091_v18, %v5091_v18 }
 0x21b   :  { %v2157_v33 = vadd.f32 %v2156_v10, %v5088_v31 }
 0x21c   :  { %5079 = vst [vmem:[#allocation2_spill] sm:$0xff] %v4056_v20  ;;  %v1368_v34 = vpop.f32.mrf.mxu2  ;;  %v2226_v35 = vadd.f32 %v2225_v50, %v2195_v17 }
 0x21e   :  { %v2227_v44 = vadd.f32 %v2226_v35, %v2196_v41  ;;  %v2200_v41 = vmul.f32 %v3865_v1, %v3865_v1 }
 0x21f   :  { %v1598_v47 = vpop.f32.mrf.mxu3 }
 0x220   :  { %v1599_v55 = vadd.f32 %v1598_v47, %v1365_v16  ;;  %v5087_v16 = vpack.c.b16 %v3910_v40, %v3906_v27 }
 0x222   :  { %v1851_v0 = vpop.f32.mrf.mxu0  ;;  %v4066_v7 = vadd.f32 %v1848_v32, %v1599_v55  ;;  %v5090_v32 = vld [vmem:[#allocation9_spill] sm:$0xff] }
 0x223   :  { %v2158_v42 = vadd.f32 %v2157_v33, %v5090_v32  ;;  %v2197_v58 = vmul.f32 %v5090_v32, %v5090_v32 }
 0x224   :  { %5083 = vst [vmem:[#allocation5_spill] sm:$0xff] %v4066_v7  ;;  %1640 = vmatmul.bf16.gmra.mxu3 %v5084_v54  ;;  %v1370_v13 = vpop.f32.mrf.mxu2 }
 0x225   :  { %1890 = vmatmul.bf16.gmra.mxu0 %v5085_v45  ;;  %v2228_v47 = vadd.f32 %v2227_v44, %v2197_v58  ;;  %v2159_v29 = vadd.f32 %v2158_v42, %v5091_v18  ;;  %v5093_v45 = vld [vmem:[#allocation11_spill] sm:$0xff]  ;;  %v2202_v44 = vmul.f32 %v3944_v8, %v3944_v8 }
 0x226   :  { %v2199_v17 = vmul.f32 %v5093_v45, %v5093_v45 }
 0x227   :  { %v1601_v5 = vpop.f32.mrf.mxu3  ;;  %v2160_v10 = vadd.f32 %v2159_v29, %v5093_v45  ;;  %v2229_v50 = vadd.f32 %v2228_v47, %v2198_v60 }
 0x228   :  { %v1602_v49 = vadd.f32 %v1601_v5, %v1368_v34  ;;  %v4093_v34 = vpop.f32.mrf.mxu1 }
 0x229   :  { %1412 = vmatmul.bf16.gmra.mxu2 %v5087_v16  ;;  %5092 = vst [vmem:[#allocation7_spill] sm:$0xff] %v4093_v34  ;;  %v2161_v35 = vadd.f32 %v2160_v10, %v3865_v1 }
 0x22a   :  { %v1853_v22 = vpop.f32.mrf.mxu0  ;;  %v4085_v4 = vadd.f32 %v1851_v0, %v1602_v49 }
 0x22b   :  { %v2162_v49 = vadd.f32 %v2161_v35, %v3908_v25 }
 0x22c   :  { %v1373_v27 = vpop.f32.mrf.mxu2 }
 0x22d   :  { %v2163_v58 = vadd.f32 %v2162_v49, %v3944_v8 }
 0x22f   :  { %v1603_v40 = vpop.f32.mrf.mxu3  ;;  %v2164_v29 = vadd.f32 %v2163_v58, %v3971_v61  ;;  %v2206_v58 = vmul.f32 %v4003_v51, %v4003_v51 }
 0x230   :  { %v1604_v55 = vadd.f32 %v1603_v40, %v1370_v13  ;;  %v2230_v13 = vadd.f32 %v2229_v50, %v2199_v17  ;;  %v4114_v42 = vpop.f32.mrf.mxu1 }
 0x231   :  { %5094 = vst [vmem:[#allocation9_spill] sm:$0xff] %v4114_v42 }
 0x232   :  { %v1856_v54 = vpop.f32.mrf.mxu0  ;;  %v4095_v0 = vadd.f32 %v1853_v22, %v1604_v55  ;;  %v2231_v33 = vadd.f32 %v2230_v13, %v2200_v41  ;;  %v2201_v22 = vmul.f32 %v3908_v25, %v3908_v25  ;;  %v2203_v55 = vmul.f32 %v3971_v61, %v3971_v61 }
 0x233   :  { %v2204_v13 = vmul.f32 %v3984_v26, %v3984_v26 }
 0x234   :  { %1645 = vmatmul.bf16.gmra.mxu3 %v1497_v3  ;;  %v1375_v5 = vpop.f32.mrf.mxu2 }
 0x237   :  { %v1606_v16 = vpop.f32.mrf.mxu3 }
 0x238   :  { %v1607_v15 = vadd.f32 %v1606_v16, %v1373_v27  ;;  %v2165_v16 = vadd.f32 %v2164_v29, %v3984_v26 }
 0x239   :  { %1895 = vmatmul.bf16.vlgmr.msra.gmra.mxu2 %v1747_v38  ;;  %v2232_v38 = vadd.f32 %v2231_v33, %v2201_v22  ;;  %v2205_v33 = vmul.f32 %v3988_v23, %v3988_v23 }
 0x23a   :  { %v1858_v53 = vpop.f32.mrf.mxu0  ;;  %v4109_v3 = vadd.f32 %v1856_v54, %v1607_v15  ;;  %v4124_v54 = vpop.f32.mrf.mxu1 }
 0x23b   :  { %v2233_v60 = vadd.f32 %v2232_v38, %v2202_v44  ;;  %5095 = vst [vmem:[#allocation10_spill] sm:$0xff] %v4124_v54 }
 0x23c   :  { %v1378_v63 = vpop.f32.mrf.mxu2 }
 0x23d   :  { %v2234_v50 = vadd.f32 %v2233_v60, %v2203_v55  ;;  %v2207_v55 = vmul.f32 %v4013_v36, %v4013_v36 }
 0x23f   :  { %v1608_v39 = vpop.f32.mrf.mxu3  ;;  %v2235_v15 = vadd.f32 %v2234_v50, %v2204_v13 }
 0x240   :  { %v1609_v27 = vadd.f32 %v1608_v39, %v1375_v5 }
 0x241   :  { %v2236_v39 = vadd.f32 %v2235_v15, %v2205_v33 }
 0x242   :  { %v1861_v40 = vpop.f32.mrf.mxu0  ;;  %v4119_v47 = vadd.f32 %v1858_v53, %v1609_v27  ;;  %v2166_v53 = vadd.f32 %v2165_v16, %v3988_v23  ;;  %v4137_v44 = vpop.f32.mrf.mxu1 }
 0x243   :  { %5096 = vst [vmem:[#allocation11_spill] sm:$0xff] %v4137_v44  ;;  %v2237_v60 = vadd.f32 %v2236_v39, %v2206_v58  ;;  %v2209_v39 = vmul.f32 %v4033_v19, %v4033_v19 }
 0x244   :  { %v1380_v10 = vpop.f32.mrf.mxu2  ;;  %v2167_v38 = vadd.f32 %v2166_v53, %v4003_v51 }
 0x245   :  { %v2238_v16 = vadd.f32 %v2237_v60, %v2207_v55 }
 0x246   :  { %v2168_v29 = vadd.f32 %v2167_v38, %v4013_v36 }
 0x247   :  { %v1611_v17 = vpop.f32.mrf.mxu3 }
 0x248   :  { %v1612_v5 = vadd.f32 %v1611_v17, %v1378_v63  ;;  %v2169_v13 = vadd.f32 %v2168_v29, %v4020_v30 }
 0x24a   :  { %v1863_v35 = vpop.f32.mrf.mxu0  ;;  %v4129_v41 = vadd.f32 %v1861_v40, %v1612_v5  ;;  %v2208_v5 = vmul.f32 %v4020_v30, %v4020_v30  ;;  %v4147_v53 = vpop.f32.mrf.mxu1 }
 0x24b   :  { %5097 = vst [vmem:[#allocation30_spill] sm:$0xff] %v4147_v53 }
 0x24c   :  { %v1383_v49 = vpop.f32.mrf.mxu2  ;;  %v2239_v33 = vadd.f32 %v2238_v16, %v2208_v5 }
 0x24f   :  { %v1613_v22 = vpop.f32.mrf.mxu3 }
 0x250   :  { %v1614_v63 = vadd.f32 %v1613_v22, %v1380_v10  ;;  %v2170_v22 = vadd.f32 %v2169_v13, %v4033_v19 }
 0x252   :  { %v1866_v27 = vpop.f32.mrf.mxu0  ;;  %v4139_v40 = vadd.f32 %v1863_v35, %v1614_v63  ;;  %v2240_v63 = vadd.f32 %v2239_v33, %v2209_v39  ;;  %v2171_v60 = vadd.f32 %v2170_v22, %v4045_v9  ;;  %v4164_v16 = vpop.f32.mrf.mxu1 }
 0x253   :  { %5098 = vst [vmem:[#allocation31_spill] sm:$0xff] %v4164_v16 }
 0x254   :  { %v1385_v17 = vpop.f32.mrf.mxu2  ;;  %v2172_v55 = vadd.f32 %v2171_v60, %v4061_v62  ;;  %v2213_v60 = vmul.f32 %v4093_v34, %v4093_v34 }
 0x256   :  { %v2173_v22 = vadd.f32 %v2172_v55, %v4083_v21 }
 0x257   :  { %v1616_v50 = vpop.f32.mrf.mxu3 }
 0x258   :  { %v1617_v15 = vadd.f32 %v1616_v50, %v1383_v49  ;;  %v2210_v49 = vmul.f32 %v4045_v9, %v4045_v9  ;;  %v2211_v50 = vmul.f32 %v4061_v62, %v4061_v62 }
 0x25a   :  { %v4149_v10 = vadd.f32 %v1866_v27, %v1617_v15  ;;  %v4151_v35 = vpop.f32.mrf.mxu0  ;;  %v2241_v27 = vadd.f32 %v2240_v63, %v2210_v49  ;;  %v2174_v63 = vadd.f32 %v2173_v22, %v4093_v34  ;;  %v4178_v49 = vpop.f32.mrf.mxu1  ;;  %v2215_v22 = vmul.f32 %v4124_v54, %v4124_v54 }
 0x25b   :  { %5099 = vst [vmem:[#allocation32_spill] sm:$0xff] %v4178_v49 }
 0x25c   :  { %v1388_v38 = vpop.f32.mrf.mxu2  ;;  %v2242_v33 = vadd.f32 %v2241_v27, %v2211_v50  ;;  %v2175_v50 = vadd.f32 %v2174_v63, %v4114_v42 }
 0x25f   :  { %v1618_v58 = vpop.f32.mrf.mxu3 }
 0x260   :  { %v4159_v29 = vadd.f32 %v1618_v58, %v1385_v17  ;;  %v2212_v17 = vmul.f32 %v4083_v21, %v4083_v21 }
 0x262   :  { %v4166_v13 = vpop.f32.mrf.mxu0  ;;  %v2243_v58 = vadd.f32 %v2242_v33, %v2212_v17  ;;  %v2176_v33 = vadd.f32 %v2175_v50, %v4124_v54 }
 0x264   :  { %v4168_v5 = vpop.f32.mrf.mxu2  ;;  %v2244_v55 = vadd.f32 %v2243_v58, %v2213_v60  ;;  %v2177_v19 = vadd.f32 %v2176_v33, %v4137_v44  ;;  %v2216_v58 = vmul.f32 %v4137_v44, %v4137_v44  ;;  %v4201_v60 = vpop.f32.mrf.mxu1 }
 0x265   :  { %5100 = vst [vmem:[#allocation33_spill] sm:$0xff] %v4201_v60 }
 0x266   :  { %v2178_v50 = vadd.f32 %v2177_v19, %v4147_v53 }
 0x267   :  { %v1621_v15 = vpop.f32.mrf.mxu3 }
 0x268   :  { %v4173_v39 = vadd.f32 %v1621_v15, %v1388_v38  ;;  %v2214_v38 = vmul.f32 %v4114_v42, %v4114_v42  ;;  %v2179_v33 = vadd.f32 %v2178_v50, %v4164_v16 }
 0x26a   :  { %v4180_v62 = vpop.f32.mrf.mxu0  ;;  %v2245_v15 = vadd.f32 %v2244_v55, %v2214_v38  ;;  %v2217_v38 = vmul.f32 %v4147_v53, %v4147_v53  ;;  %v2180_v19 = vadd.f32 %v2179_v33, %v4178_v49 }
 0x26c   :  { %v4182_v9 = vpop.f32.mrf.mxu2  ;;  %v2246_v21 = vadd.f32 %v2245_v15, %v2215_v22  ;;  %v2218_v22 = vmul.f32 %v4164_v16, %v4164_v16  ;;  %v4215_v30 = vpop.f32.mrf.mxu1  ;;  %v2181_v50 = vadd.f32 %v2180_v19, %v4201_v60  ;;  %v1972_v16 = vmul.f32 %v3973_v24, %v3973_v24 }
 0x26d   :  { %5101 = vst [vmem:[#allocation34_spill] sm:$0xff] %v4215_v30  ;;  %v2221_v33 = vmul.f32 %v4215_v30, %v4215_v30  ;;  %v1973_v19 = vmul.f32 %v3986_v14, %v3986_v14 }
 0x26e   :  { %v2247_v55 = vadd.f32 %v2246_v21, %v2216_v58  ;;  %v2219_v58 = vmul.f32 %v4178_v49, %v4178_v49  ;;  %v1971_v49 = vmul.f32 %v3965_v48, %v3965_v48 }
 0x26f   :  { %v4184_v27 = vpop.f32.mrf.mxu3 }
 0x270   :  { %v2248_v15 = vadd.f32 %v2247_v55, %v2217_v38  ;;  %v2220_v38 = vmul.f32 %v4201_v60, %v4201_v60  ;;  %v2003_v60 = vadd.f32 %v1972_v16, %v1971_v49 }
 0x272   :  { %v4199_v63 = vpop.f32.mrf.mxu0  ;;  %v2249_v21 = vadd.f32 %v2248_v15, %v2218_v22  ;;  %v2182_v15 = vadd.f32 %v2181_v50, %v4215_v30  ;;  %v2004_v8 = vadd.f32 %v2003_v60, %v1973_v19 }
 0x274   :  { %v4192_v17 = vpop.f32.mrf.mxu2  ;;  %v2250_v55 = vadd.f32 %v2249_v21, %v2219_v58  ;;  %v4236_v21 = vpop.f32.mrf.mxu1  ;;  %v1933_v58 = vadd.f32 %v3973_v24, %v3965_v48  ;;  %v1975_v24 = vmul.f32 %v4001_v2, %v4001_v2  ;;  %v1976_v48 = vmul.f32 %v4005_v28, %v4005_v28 }
 0x275   :  { %v2183_v23 = vadd.f32 %v2182_v15, %v4236_v21  ;;  %v2222_v26 = vmul.f32 %v4236_v21, %v4236_v21 }
 0x276   :  { %v2251_v51 = vadd.f32 %v2250_v55, %v2220_v38  ;;  %v1974_v55 = vmul.f32 %v3990_v12, %v3990_v12  ;;  %v1934_v61 = vadd.f32 %v1933_v58, %v3986_v14 }
 0x277   :  { %v4194_v34 = vpop.f32.mrf.mxu3  ;;  %v2184_v25 = vrot.slane %v2183_v23, 4 }
 0x278   :  { %v2252_v30 = vadd.f32 %v2251_v51, %v2221_v33  ;;  %v1935_v16 = vadd.f32 %v1934_v61, %v3990_v12  ;;  %v2005_v49 = vadd.f32 %v2004_v8, %v1974_v55  ;;  %v1977_v33 = vmul.f32 %v4018_v46, %v4018_v46 }
 0x279   :  { %v1978_v61 = vmul.f32 %v4022_v52, %v4022_v52  ;;  %v2185_v12 = vadd.f32 %v2184_v25, %v2183_v23  ;;  %v1981_v25 = vmul.f32 %v4056_v20, %v4056_v20 }
 0x27a   :  { %v4213_v44 = vpop.f32.mrf.mxu0  ;;  %v2253_v31 = vadd.f32 %v2252_v30, %v2222_v26  ;;  %v1936_v51 = vadd.f32 %v1935_v16, %v4001_v2  ;;  %v2006_v15 = vadd.f32 %v2005_v49, %v1975_v24  ;;  %v1979_v16 = vmul.f32 %v4035_v6, %v4035_v6 }
 0x27c   :  { %v4206_v54 = vpop.f32.mrf.mxu2  ;;  %v1937_v58 = vadd.f32 %v1936_v51, %v4005_v28  ;;  %v2007_v19 = vadd.f32 %v2006_v15, %v1976_v48  ;;  %v2254_v26 = vrot.slane %v2253_v31, 4  ;;  %v1980_v48 = vmul.f32 %v4037_v56, %v4037_v56 }
 0x27d   :  { %v2186_v15 = vrot.slane %v2185_v12, 2 }
 0x27e   :  { %v1938_v30 = vadd.f32 %v1937_v58, %v4018_v46  ;;  %v2008_v24 = vadd.f32 %v2007_v19, %v1977_v33  ;;  %v2255_v28 = vadd.f32 %v2254_v26, %v2253_v31  ;;  %v1982_v58 = vmul.f32 %v4066_v7, %v4066_v7 }
 0x27f   :  { %v4208_v42 = vpop.f32.mrf.mxu3 }
 0x280   :  { %v1939_v49 = vadd.f32 %v1938_v30, %v4022_v52  ;;  %v2009_v51 = vadd.f32 %v2008_v24, %v1978_v61  ;;  %v2187_v30 = vadd.f32 %v2186_v15, %v2185_v12  ;;  %v2256_v24 = vrot.slane %v2255_v28, 2 }
 0x281   :  { %v1985_v15 = vmul.f32 %v4109_v3, %v4109_v3 }
 0x282   :  { %v4232_v22 = vpop.f32.mrf.mxu0  ;;  %v1940_v2 = vadd.f32 %v1939_v49, %v4035_v6  ;;  %v2010_v14 = vadd.f32 %v2009_v51, %v1979_v16  ;;  %v1983_v16 = vmul.f32 %v4085_v4, %v4085_v4  ;;  %v1984_v51 = vmul.f32 %v4095_v0, %v4095_v0 }
 0x284   :  { %v4220_v53 = vpop.f32.mrf.mxu2  ;;  %v1941_v23 = vadd.f32 %v1940_v2, %v4037_v56  ;;  %v2011_v33 = vadd.f32 %v2010_v14, %v1980_v48  ;;  %v2188_v48 = vrot.slane %v2187_v30, 1  ;;  %v2257_v56 = vadd.f32 %v2256_v24, %v2255_v28 }
 0x285   :  { %v1987_v24 = vmul.f32 %v4129_v41, %v4129_v41 }
 0x286   :  { %v1942_v31 = vadd.f32 %v1941_v23, %v4056_v20  ;;  %v2012_v26 = vadd.f32 %v2011_v33, %v1981_v25  ;;  %v1986_v33 = vmul.f32 %v4119_v47, %v4119_v47 }
 0x287   :  { %v4222_v36 = vpop.f32.mrf.mxu3 }
 0x288   :  { %v1943_v2 = vadd.f32 %v1942_v31, %v4066_v7  ;;  %v2013_v14 = vadd.f32 %v2012_v26, %v1982_v58  ;;  %v2189_v31 = vadd.f32 %v2188_v48, %v2187_v30  ;;  %v2258_v26 = vrot.slane %v2257_v56, 1  ;;  %v5102_v48 = vld [vmem:[#allocation3_spill] sm:$0xff] }
 0x289   :  { %v1624_v30 = vadd.f32 %v4184_v27, %v4168_v5 }
 0x28a   :  { %v4261_v60 = vpop.f32.mrf.mxu0  ;;  %v1944_v6 = vadd.f32 %v1943_v2, %v4085_v4  ;;  %v2014_v12 = vadd.f32 %v2013_v14, %v1983_v16  ;;  %v4309_v14 = vadd.f32 %v4151_v35, %v4159_v29  ;;  %v1627_v35 = vadd.f32 %v4194_v34, %v4182_v9 }
 0x28c   :  { %v4244_v50 = vpop.f32.mrf.mxu2  ;;  %v1945_v25 = vadd.f32 %v1944_v6, %v4095_v0  ;;  %v2015_v23 = vadd.f32 %v2014_v12, %v1984_v51  ;;  %v1988_v6 = vmul.f32 %v4139_v40, %v4139_v40  ;;  %v4314_v12 = vmul.f32 %v2189_v31, %v5102_v48 }
 0x28d   :  { %v1990_v27 = vmul.f32 %v4309_v14, %v4309_v14  ;;  %v1629_v31 = vadd.f32 %v4208_v42, %v4192_v17 }
 0x28e   :  { %v1946_v7 = vadd.f32 %v1945_v25, %v4109_v3  ;;  %v2016_v28 = vadd.f32 %v2015_v23, %v1985_v15  ;;  %v2259_v15 = vadd.f32 %v2258_v26, %v2257_v56  ;;  %v4329_v56 = vadd.f32 %v4180_v62, %v1624_v30 }
 0x28f   :  { %v4246_v38 = vpop.f32.mrf.mxu3  ;;  %v1632_v62 = vadd.f32 %v4222_v36, %v4206_v54 }
 0x290   :  { %v1947_v16 = vadd.f32 %v1946_v7, %v4119_v47  ;;  %v2017_v2 = vadd.f32 %v2016_v28, %v1986_v33  ;;  %v1989_v7 = vmul.f32 %v4149_v10, %v4149_v10  ;;  %v4321_v33 = vadd.f32 %v4166_v13, %v4173_v39 }
 0x291   :  { %v2260_v13 = vmul.f32 %v2259_v15, %v5102_v48  ;;  %v2261_v39 = vmul.f32 %v4314_v12, %v4314_v12  ;;  %v1634_v30 = vadd.f32 %v4246_v38, %v4220_v53  ;;  %v4356_v36 = vadd.f32 %v4232_v22, %v1632_v62 }
 0x292   :  { %v4288_v49 = vpop.f32.mrf.mxu0  ;;  %v1948_v25 = vadd.f32 %v1947_v16, %v4129_v41  ;;  %v2018_v23 = vadd.f32 %v2017_v2, %v1987_v24  ;;  %v1991_v24 = vmul.f32 %v4321_v33, %v4321_v33  ;;  %v4340_v16 = vadd.f32 %v4199_v63, %v1627_v35 }
 0x293   :  { %v1992_v2 = vmul.f32 %v4329_v56, %v4329_v56  ;;  %v2262_v15 = vsub.f32 %v2260_v13, %v2261_v39  ;;  %v4364_v38 = vadd.f32 %v4261_v60, %v1634_v30  ;;  %v1995_v13 = vmul.f32 %v4356_v36, %v4356_v36 }
 0x294   :  { %v4265_v8 = vpop.f32.mrf.mxu2  ;;  %v1949_v29 = vadd.f32 %v1948_v25, %v4139_v40  ;;  %v2019_v5 = vadd.f32 %v2018_v23, %v1988_v6  ;;  %v4348_v6 = vadd.f32 %v4213_v44, %v1629_v31  ;;  %v1993_v23 = vmul.f32 %v4340_v16, %v4340_v16 }
 0x296   :  { %v1950_v9 = vadd.f32 %v1949_v29, %v4149_v10  ;;  %v2020_v34 = vadd.f32 %v2019_v5, %v1989_v7  ;;  %v1994_v53 = vmul.f32 %v4348_v6, %v4348_v6  ;;  %v4366_v5 = vadd.f32 1e-05, %v2262_v15 }
 0x297   :  { %v4267_v55 = vpop.f32.mrf.mxu3 }
 0x298   :  { %v1951_v42 = vadd.f32 %v1950_v9, %v4309_v14  ;;  %v2021_v17 = vadd.f32 %v2020_v34, %v1990_v27  ;;  %v1637_v44 = vadd.f32 %v4267_v55, %v4244_v50  ;;  %v1996_v34 = vmul.f32 %v4364_v38, %v4364_v38 }
 0x299   :  { %2795 = vrsqrt.f32 %v4366_v5  ;;  %vm2270_vm12 = vweird.f32 %v4366_v5 }
 0x29a   :  { %v1888_v51 = vpop.f32.mrf.mxu0  ;;  %v1952_v25 = vadd.f32 %v1951_v42, %v4321_v33  ;;  %v2022_v63 = vadd.f32 %v2021_v17, %v1991_v24  ;;  %v4375_v39 = vadd.f32 %v4288_v49, %v1637_v44 }
 0x29c   :  { %v4281_v19 = vpop.f32.mrf.mxu2  ;;  %v1953_v7 = vadd.f32 %v1952_v25, %v4329_v56  ;;  %v2023_v35 = vadd.f32 %v2022_v63, %v1992_v2  ;;  %v1997_v49 = vmul.f32 %v4375_v39, %v4375_v39 }
 0x29e   :  { %v1954_v27 = vadd.f32 %v1953_v7, %v4340_v16  ;;  %v2024_v31 = vadd.f32 %v2023_v35, %v1993_v23 }
 0x29f   :  { %v4283_v61 = vpop.f32.mrf.mxu3 }
 0x2a0   :  { %v1639_v22 = vadd.f32 %v4283_v61, %v4265_v8  ;;  %v1955_v55 = vadd.f32 %v1954_v27, %v4348_v6  ;;  %v2025_v9 = vadd.f32 %v2024_v31, %v1994_v53 }
 0x2a2   :  { %v1891_v54 = vpop.f32.mrf.mxu0  ;;  %v1956_v8 = vadd.f32 %v1955_v55, %v4356_v36  ;;  %v4382_v61 = vadd.f32 %v1888_v51, %v1639_v22  ;;  %v2026_v62 = vadd.f32 %v2025_v9, %v1995_v13 }
 0x2a4   :  { %v4299_v20 = vpop.f32.mrf.mxu2  ;;  %v1957_v42 = vadd.f32 %v1956_v8, %v4364_v38  ;;  %v1998_v15 = vmul.f32 %v4382_v61, %v4382_v61 }
 0x2a6   :  { %v1958_v30 = vadd.f32 %v1957_v42, %v4375_v39 }
 0x2a7   :  { %v1641_v58 = vpop.f32.mrf.mxu3 }
 0x2a8   :  { %v1642_v60 = vadd.f32 %v1641_v58, %v4281_v19  ;;  %v2027_v19 = vadd.f32 %v2026_v62, %v1996_v34  ;;  %v1959_v63 = vadd.f32 %v1958_v30, %v4382_v61 }
 0x2aa   :  { %v4388_v17 = vadd.f32 %v1891_v54, %v1642_v60  ;;  %v1893_v58 = vpop.f32.mrf.mxu0 }
 0x2ac   :  { %v1413_v26 = vpop.f32.mrf.mxu2  ;;  %v1999_v23 = vmul.f32 %v4388_v17, %v4388_v17  ;;  %v1960_v35 = vadd.f32 %v1959_v63, %v4388_v17 }
 0x2af   :  { %v1643_v28 = vpop.f32.mrf.mxu3 }
 0x2b0   :  { %v1644_v24 = vadd.f32 %v1643_v28, %v4299_v20  ;;  %v2796_v20 = vpop.eup %2795  ;;  %v2028_v28 = vadd.f32 %v2027_v19, %v1997_v49 }
 0x2b1   :  { %v2265_v27 = vmul.f32 %v2796_v20, %v4366_v5  ;;  %vm2271_vm13 = vweird.f32 %v2796_v20  ;;  %v4423_v5 = vld [vmem:[%s4962_s3] sm:$0xff] }
 0x2b2   :  { %v4393_v51 = vadd.f32 %v1893_v58, %v1644_v24  ;;  %v2029_v44 = vadd.f32 %v2028_v28, %v1998_v15  ;;  %vm2272_vm14 = vmor %vm2270_vm12, %vm2271_vm13 }
 0x2b3   :  { %v2266_v34 = vmul.f32 %v2796_v20, %v2265_v27 }
 0x2b4   :  { %v1415_v29 = vpop.f32.mrf.mxu2  ;;  %v2000_v53 = vmul.f32 %v4393_v51, %v4393_v51  ;;  %v2030_v22 = vadd.f32 %v2029_v44, %v1999_v23 }
 0x2b5   :  { %v2267_v19 = vmul.f32 0.5, %v2266_v34 }
 0x2b6   :  { %v2031_v60 = vadd.f32 %v2030_v22, %v2000_v53 }
 0x2b7   :  { %v1646_v50 = vpop.f32.mrf.mxu3  ;;  %v2268_v15 = vsub.f32 1.5, %v2267_v19  ;;  %v5104_v19 = vld [vmem:[#allocation8_spill] sm:$0xff] }
 0x2b8   :  { %v1647_v25 = vadd.f32 %v1646_v50, %v1413_v26  ;;  %v1961_v26 = vadd.f32 %v1960_v35, %v4393_v51 }
 0x2bc   :  { %v1896_v2 = vpop.f32.mrf.mxu2 }
 0x2bd   :  { %v4398_v54 = vadd.f32 %v1896_v2, %v1647_v25 }
 0x2bf   :  { %v1648_v7 = vpop.f32.mrf.mxu3  ;;  %v2001_v31 = vmul.f32 %v4398_v54, %v4398_v54  ;;  %v1962_v55 = vadd.f32 %v1961_v26, %v4398_v54 }
 0x2c0   :  { %v1649_v13 = vadd.f32 %v1648_v7, %v1415_v29  ;;  %v2269_v7 = vmul.f32 %v2796_v20, %v2268_v15 }
 0x2c1   :  { %v2032_v8 = vadd.f32 %v2031_v60, %v2001_v31  ;;  %v2306_v60 = vsub.f32 %v4236_v21, %v4314_v12  ;;  %v2283_v21 = vsub.f32 %v5093_v45, %v4314_v12 }
 0x2c2   :  { %v2273_v22 = vsel %vm2272_vm14, %v2796_v20, %v2269_v7  ;;  %v2275_v20 = vsub.f32 %v5077_v37, %v4314_v12  ;;  %v2279_v37 = vsub.f32 %v5086_v11, %v4314_v12 }
 0x2c4   :  { %v1898_v50 = vpop.f32.mrf.mxu2 }
 0x2c5   :  { %v4408_v9 = vadd.f32 %v1898_v50, %v1649_v13  ;;  %v2274_v13 = vmul.f32 %v4423_v5, %v2273_v22 }
 0x2c7   :  { %v1963_v24 = vadd.f32 %v1962_v55, %v4408_v9  ;;  %v2002_v62 = vmul.f32 %v4408_v9, %v4408_v9  ;;  %v4430_v34 = vperm.slane %v2274_v13, 4 }
 0x2c9   :  { %v1964_v42 = vrot.slane %v1963_v24, 4  ;;  %v2033_v49 = vadd.f32 %v2032_v8, %v2002_v62  ;;  %v2276_v8 = vsub.f32 %v5078_v59, %v4314_v12  ;;  %v2282_v62 = vsub.f32 %v5091_v18, %v4314_v12 }
 0x2ca   :  { %v2284_v59 = vsub.f32 %v3865_v1, %v4314_v12  ;;  %v2280_v18 = vsub.f32 %v5104_v19, %v4314_v12  ;;  %v2316_v15 = vmul.f32 %v4430_v34, %v2283_v21  ;;  %v5118_v19 = vld [vmem:[#allocation21_spill] sm:$0xff] }
 0x2cb   :  { %v1965_v58 = vadd.f32 %v1964_v42, %v1963_v24  ;;  %v2034_v2 = vrot.slane %v2033_v49, 4  ;;  %v2281_v24 = vsub.f32 %v5090_v32, %v4314_v12  ;;  %v2277_v42 = vsub.f32 %v5080_v57, %v4314_v12 }
 0x2cc   :  { %v2339_v32 = vmul.f32 %v4430_v34, %v2306_v60  ;;  %v2309_v45 = vmul.f32 %v4430_v34, %v2276_v8  ;;  %v2313_v11 = vmul.f32 %v4430_v34, %v2280_v18  ;;  %v5113_v8 = vld [vmem:[#allocation14_spill] sm:$0xff]  ;;  %v2289_v18 = vsub.f32 %v5118_v19, %v4314_v12  ;;  %v5127_v19 = vld [vmem:[#allocation9_spill] sm:$0xff] }
 0x2cd   :  { %v1966_v30 = vrot.slane %v1965_v58, 2  ;;  %v2035_v29 = vadd.f32 %v2034_v2, %v2033_v49  ;;  %v2278_v49 = vsub.f32 %v5082_v43, %v4314_v12  ;;  %v2310_v57 = vmul.f32 %v4430_v34, %v2277_v42 }
 0x2ce   :  { %v2312_v43 = vmul.f32 %v4430_v34, %v2279_v37  ;;  %v2314_v1 = vmul.f32 %v4430_v34, %v2281_v24  ;;  %v2285_v24 = vsub.f32 %v5113_v8, %v4314_v12  ;;  %v5125_v8 = vld [vmem:[#allocation6_spill] sm:$0xff] }
 0x2cf   :  { %v1967_v25 = vadd.f32 %v1966_v30, %v1965_v58  ;;  %v2036_v28 = vrot.slane %v2035_v29, 2  ;;  %v2308_v58 = vmul.f32 %v4430_v34, %v2275_v20  ;;  %v2311_v2 = vmul.f32 %v4430_v34, %v2278_v49  ;;  %v5116_v49 = vld [vmem:[#allocation17_spill] sm:$0xff] }
 0x2d0   :  { %v2287_v37 = vsub.f32 %v5116_v49, %v4314_v12  ;;  %v5126_v49 = vld [vmem:[#allocation7_spill] sm:$0xff] }
 0x2d1   :  { %v1968_v63 = vrot.slane %v1967_v25, 1  ;;  %v2037_v23 = vadd.f32 %v2036_v28, %v2035_v29  ;;  %v2315_v29 = vmul.f32 %v4430_v34, %v2282_v62  ;;  %v2317_v28 = vmul.f32 %v4430_v34, %v2284_v59  ;;  %v5114_v62 = vld [vmem:[#allocation15_spill] sm:$0xff] }
 0x2d2   :  { %v2286_v21 = vsub.f32 %v5114_v62, %v4314_v12  ;;  %v5117_v59 = vld [vmem:[#allocation19_spill] sm:$0xff]  ;;  %v2296_v62 = vsub.f32 %v5125_v8, %v4314_v12  ;;  %v5132_v8 = vld [vmem:[#allocation32_spill] sm:$0xff] }
 0x2d3   :  { %v1969_v44 = vadd.f32 %v1968_v63, %v1967_v25  ;;  %v2038_v35 = vrot.slane %v2037_v23, 1  ;;  %v4472_v63 = vperm.slane %v4423_v5, 3 }
 0x2d5   :  { %v4415_v53 = vmul.f32 %v1969_v44, %v5102_v48  ;;  %v2039_v27 = vadd.f32 %v2038_v35, %v2037_v23 }
 0x2d7   :  { %v2040_v26 = vmul.f32 %v2039_v27, %v5102_v48  ;;  %v2041_v31 = vmul.f32 %v4415_v53, %v4415_v53  ;;  %v4434_v48 = vperm.slane %v4423_v5, 5 }
 0x2d9   :  { %v2042_v50 = vsub.f32 %v2040_v26, %v2041_v31  ;;  %5103 = vst [vmem:[#allocation3_spill] sm:$0xff] %v4434_v48  ;;  %v4475_v23 = vadd.f32 %v4434_v48, %v2339_v32  ;;  %v4478_v7 = vadd.f32 %v4434_v48, %v2308_v58  ;;  %v4481_v44 = vadd.f32 %v4434_v48, %v2309_v45  ;;  %v5119_v58 = vld [vmem:[#allocation24_spill] sm:$0xff] }
 0x2da   :  { %v4485_v27 = vadd.f32 %v4434_v48, %v2310_v57  ;;  %v4488_v22 = vadd.f32 %v4434_v48, %v2311_v2  ;;  %v4491_v26 = vadd.f32 %v4434_v48, %v2312_v43  ;;  %v4494_v31 = vadd.f32 %v4434_v48, %v2313_v11  ;;  %v5120_v57 = vld [vmem:[#allocation26_spill] sm:$0xff]  ;;  %v5121_v43 = vld [vmem:[#allocation27_spill] sm:$0xff] }
 0x2db   :  { %v4426_v55 = vadd.f32 1e-05, %v2042_v50  ;;  %5105 = vst [vmem:[#allocation8_spill] sm:$0xff] %v4475_v23  ;;  %v4497_v13 = vadd.f32 %v4434_v48, %v2314_v1  ;;  %v4500_v50 = vadd.f32 %v4434_v48, %v2315_v29  ;;  %v4503_v60 = vadd.f32 %v4434_v48, %v2316_v15  ;;  %v5122_v1 = vld [vmem:[#allocation13_spill] sm:$0xff] }
 0x2dc   :  { %5106 = vst [vmem:[#allocation35_spill] sm:$0xff] %v4485_v27  ;;  %v4510_v42 = vadd.f32 %v4434_v48, %v2317_v28  ;;  %v2288_v32 = vsub.f32 %v5117_v59, %v4314_v12  ;;  %v2290_v45 = vsub.f32 %v5119_v58, %v4314_v12  ;;  %v2291_v2 = vsub.f32 %v5120_v57, %v4314_v12  ;;  %v5123_v15 = vld [vmem:[#allocation29_spill] sm:$0xff]  ;;  %v5124_v28 = vld [vmem:[#allocation4_spill] sm:$0xff] }
 0x2dd   :  { %2797 = vrsqrt.f32 %v4426_v55  ;;  %5107 = vst [vmem:[#allocation36_spill] sm:$0xff] %v4488_v22  ;;  %v2292_v11 = vsub.f32 %v5121_v43, %v4314_v12  ;;  %v2293_v29 = vsub.f32 %v5122_v1, %v4314_v12  ;;  %v2297_v59 = vsub.f32 %v5126_v49, %v4314_v12  ;;  %v5128_v43 = vld [vmem:[#allocation10_spill] sm:$0xff]  ;;  %v5129_v1 = vld [vmem:[#allocation11_spill] sm:$0xff]  ;;  %v5133_v49 = vld [vmem:[#allocation33_spill] sm:$0xff] }
 0x2de   :  { %5108 = vst [vmem:[#allocation37_spill] sm:$0xff] %v4491_v26  ;;  %v2298_v58 = vsub.f32 %v5127_v19, %v4314_v12  ;;  %v2304_v26 = vsub.f32 %v5133_v49, %v4314_v12  ;;  %v2319_v22 = vmul.f32 %v4430_v34, %v2286_v21  ;;  %v2322_v23 = vmul.f32 %v4430_v34, %v2289_v18 }
 0x2df   :  { %5109 = vst [vmem:[#allocation38_spill] sm:$0xff] %v4494_v31  ;;  %v2303_v31 = vsub.f32 %v5132_v8, %v4314_v12  ;;  %v2324_v8 = vmul.f32 %v4430_v34, %v2291_v2  ;;  %v2325_v27 = vmul.f32 %v4430_v34, %v2292_v11  ;;  %vm2050_vm0 = vweird.f32 %v4426_v55 }
 0x2e0   :  { %5110 = vst [vmem:[#allocation39_spill] sm:$0xff] %v4497_v13  ;;  %v2331_v18 = vmul.f32 %v4430_v34, %v2298_v58 }
 0x2e1   :  { %5111 = vst [vmem:[#allocation40_spill] sm:$0xff] %v4500_v50 }
 0x2e2   :  { %5112 = vst [vmem:[#allocation41_spill] sm:$0xff] %v4503_v60  ;;  %v2300_v60 = vsub.f32 %v5129_v1, %v4314_v12  ;;  %v2320_v1 = vmul.f32 %v4430_v34, %v2287_v37  ;;  %v2329_v37 = vmul.f32 %v4430_v34, %v2296_v62  ;;  %v4577_v62 = vmul.f32 %v4430_v34, %v2304_v26 }
 0x2e3   :  { %v4462_v30 = vpop.eup %2797  ;;  %5115 = vst [vmem:[#allocation14_spill] sm:$0xff] %v4510_v42  ;;  %v2299_v42 = vsub.f32 %v5128_v43, %v4314_v12  ;;  %v2318_v43 = vmul.f32 %v4430_v34, %v2285_v24  ;;  %v4598_v26 = vadd.f32 %v4434_v48, %v2322_v23 }
 0x2e4   :  { %v2045_v25 = vmul.f32 %v4462_v30, %v4426_v55  ;;  %vm2051_vm15 = vweird.f32 %v4462_v30  ;;  %v2333_v2 = vmul.f32 %v4430_v34, %v2300_v60  ;;  %5137 = vst [vmem:[#allocation15_spill] sm:$0xff] %v4577_v62  ;;  %v4589_v60 = vadd.f32 %v4434_v48, %v2319_v22 }
 0x2e5   :  { %vm4570_vm1 = vmor %vm2050_vm0, %vm2051_vm15 }
 0x2e6   :  { %v2046_v35 = vmul.f32 %v4462_v30, %v2045_v25  ;;  %v2294_v25 = vsub.f32 %v5123_v15, %v4314_v12  ;;  %v5130_v15 = vld [vmem:[#allocation30_spill] sm:$0xff] }
 0x2e7   :  { %v2301_v50 = vsub.f32 %v5130_v15, %v4314_v12  ;;  %v2321_v15 = vmul.f32 %v4430_v34, %v2288_v32  ;;  %v2330_v32 = vmul.f32 %v4430_v34, %v2297_v59 }
 0x2e8   :  { %v2047_v20 = vmul.f32 0.5, %v2046_v35  ;;  %v2295_v35 = vsub.f32 %v5124_v28, %v4314_v12  ;;  %v5131_v28 = vld [vmem:[#allocation31_spill] sm:$0xff]  ;;  %v2327_v24 = vmul.f32 %v4430_v34, %v2294_v25 }
 0x2e9   :  { %v2302_v13 = vsub.f32 %v5131_v28, %v4314_v12  ;;  %v2323_v28 = vmul.f32 %v4430_v34, %v2290_v45  ;;  %v2332_v45 = vmul.f32 %v4430_v34, %v2299_v42  ;;  %v2334_v11 = vmul.f32 %v4430_v34, %v2301_v50 }
 0x2ea   :  { %v2048_v57 = vsub.f32 1.5, %v2047_v20  ;;  %v5134_v20 = vld [vmem:[#allocation34_spill] sm:$0xff]  ;;  %v2328_v21 = vmul.f32 %v4430_v34, %v2295_v35  ;;  %v2336_v35 = vmul.f32 %v4430_v34, %v2303_v31  ;;  %v4586_v50 = vadd.f32 %v4434_v48, %v2318_v43 }
 0x2eb   :  { %v2305_v19 = vsub.f32 %v5134_v20, %v4314_v12  ;;  %v2326_v12 = vmul.f32 %v4430_v34, %v2293_v29  ;;  %v2335_v25 = vmul.f32 %v4430_v34, %v2302_v13  ;;  %v4592_v13 = vadd.f32 %v4434_v48, %v2320_v1 }
 0x2ec   :  { %v2049_v49 = vmul.f32 %v4462_v30, %v2048_v57  ;;  %v4595_v31 = vadd.f32 %v4434_v48, %v2321_v15  ;;  %v4607_v42 = vadd.f32 %v4434_v48, %v2325_v27  ;;  %v4613_v58 = vadd.f32 %v4434_v48, %v2327_v24  ;;  %v5144_v24 = vld [vmem:[#allocation20_spill] sm:$0xff] }
 0x2ed   :  { %v4580_v59 = vmul.f32 %v4430_v34, %v2305_v19  ;;  %v4601_v34 = vadd.f32 %v4434_v48, %v2323_v28  ;;  %v4610_v22 = vadd.f32 %v4434_v48, %v2326_v12  ;;  %v4616_v57 = vadd.f32 %v4434_v48, %v2328_v21  ;;  %v5142_v28 = vld [vmem:[#allocation16_spill] sm:$0xff] }
 0x2ee   :  { %v2053_v55 = vsel %vm4570_vm1, %v4462_v30, %v2049_v49  ;;  %v4604_v30 = vadd.f32 %v4434_v48, %v2324_v8  ;;  %v4620_v20 = vadd.f32 %v4434_v48, %v2329_v37  ;;  %v4623_v19 = vadd.f32 %v4434_v48, %v2330_v32  ;;  %v5143_v49 = vld [vmem:[#allocation18_spill] sm:$0xff] }
 0x2ef   :  { %5138 = vst [vmem:[#allocation17_spill] sm:$0xff] %v4580_v59  ;;  %v2054_v23 = vmul.f32 %v4423_v5, %v2053_v55  ;;  %v4626_v27 = vadd.f32 %v4434_v48, %v2331_v18  ;;  %v4629_v43 = vadd.f32 %v4434_v48, %v2332_v45  ;;  %v4632_v1 = vadd.f32 %v4434_v48, %v2333_v2  ;;  %v5146_v32 = vld [vmem:[#allocation22_spill] sm:$0xff]  ;;  %v5147_v45 = vld [vmem:[#allocation23_spill] sm:$0xff]  ;;  %v5152_v59 = vld [vmem:[#allocation5_spill] sm:$0xff] }
 0x2f0   :  { %v4635_v15 = vadd.f32 %v4434_v48, %v2334_v11  ;;  %v4638_v5 = vadd.f32 %v4434_v48, %v2335_v25  ;;  %v2055_v8 = vsub.f32 %v5142_v28, %v4415_v53  ;;  %v2056_v12 = vsub.f32 %v5143_v49, %v4415_v53  ;;  %v5148_v11 = vld [vmem:[#allocation25_spill] sm:$0xff]  ;;  %v5149_v28 = vld [vmem:[#allocation12_spill] sm:$0xff] }
 0x2f1   :  { %5139 = vst [vmem:[#allocation19_spill] sm:$0xff] %v4632_v1  ;;  %v2057_v21 = vsub.f32 %v5144_v24, %v4415_v53  ;;  %v4647_v37 = vadd.f32 %v4434_v48, %v2336_v35  ;;  %v2058_v18 = vsub.f32 %v5146_v32, %v4415_v53  ;;  %v2059_v2 = vsub.f32 %v5147_v45, %v4415_v53  ;;  %v5150_v35 = vld [vmem:[#allocation28_spill] sm:$0xff]  ;;  %v5151_v32 = vld [vmem:[#allocation2_spill] sm:$0xff] }
 0x2f2   :  { %5140 = vst [vmem:[#allocation21_spill] sm:$0xff] %v4635_v15  ;;  %v2060_v29 = vsub.f32 %v5148_v11, %v4415_v53  ;;  %v2061_v25 = vsub.f32 %v4018_v46, %v4415_v53  ;;  %v2062_v55 = vsub.f32 %v4022_v52, %v4415_v53  ;;  %v2063_v49 = vsub.f32 %v5149_v28, %v4415_v53 }
 0x2f3   :  { %5141 = vst [vmem:[#allocation24_spill] sm:$0xff] %v4638_v5  ;;  %v2064_v24 = vsub.f32 %v5150_v35, %v4415_v53  ;;  %v2065_v45 = vsub.f32 %v5151_v32, %v4415_v53  ;;  %v2066_v11 = vsub.f32 %v5152_v59, %v4415_v53  ;;  %v2067_v46 = vsub.f32 %v4085_v4, %v4415_v53 }
 0x2f4   :  { %5145 = vst [vmem:[#allocation26_spill] sm:$0xff] %v4647_v37  ;;  %v4663_v37 = vperm.slane %v2054_v23, 2  ;;  %v2068_v52 = vsub.f32 %v4095_v0, %v4415_v53  ;;  %v2069_v28 = vsub.f32 %v4109_v3, %v4415_v53  ;;  %v2070_v35 = vsub.f32 %v4119_v47, %v4415_v53 }
 0x2f5   :  { %v2071_v23 = vsub.f32 %v4129_v41, %v4415_v53  ;;  %v2072_v32 = vsub.f32 %v4139_v40, %v4415_v53  ;;  %v2073_v59 = vsub.f32 %v4149_v10, %v4415_v53  ;;  %v2074_v4 = vsub.f32 %v4309_v14, %v4415_v53 }
 0x2f6   :  { %v2075_v0 = vsub.f32 %v4321_v33, %v4415_v53  ;;  %v2076_v3 = vsub.f32 %v4329_v56, %v4415_v53  ;;  %v2077_v47 = vsub.f32 %v4340_v16, %v4415_v53  ;;  %v2078_v41 = vsub.f32 %v4348_v6, %v4415_v53 }
 0x2f7   :  { %v2079_v40 = vsub.f32 %v4356_v36, %v4415_v53  ;;  %v2088_v10 = vmul.f32 %v4663_v37, %v2055_v8  ;;  %v2080_v14 = vsub.f32 %v4364_v38, %v4415_v53  ;;  %v2081_v33 = vsub.f32 %v4375_v39, %v4415_v53 }
 0x2f8   :  { %v2082_v56 = vsub.f32 %v4382_v61, %v4415_v53  ;;  %v2086_v16 = vsub.f32 %v4408_v9, %v4415_v53  ;;  %v2083_v6 = vsub.f32 %v4388_v17, %v4415_v53  ;;  %v2084_v36 = vsub.f32 %v4393_v51, %v4415_v53 }
 0x2f9   :  { %v2085_v8 = vsub.f32 %v4398_v54, %v4415_v53  ;;  %v2089_v38 = vmul.f32 %v4663_v37, %v2056_v12  ;;  %v2090_v5 = vmul.f32 %v4663_v37, %v2057_v21  ;;  %v2091_v39 = vmul.f32 %v4663_v37, %v2058_v18 }
 0x2fa   :  { %v2092_v61 = vmul.f32 %v4663_v37, %v2059_v2  ;;  %v2119_v48 = vmul.f32 %v4663_v37, %v2086_v16  ;;  %v2093_v9 = vmul.f32 %v4663_v37, %v2060_v29  ;;  %v2094_v17 = vmul.f32 %v4663_v37, %v2061_v25 }
 0x2fb   :  { %v2095_v62 = vmul.f32 %v4663_v37, %v2062_v55  ;;  %v2121_v51 = vadd.f32 %v4472_v63, %v2088_v10  ;;  %v2096_v54 = vmul.f32 %v4663_v37, %v2063_v49  ;;  %v2097_v53 = vmul.f32 %v4663_v37, %v2064_v24 }
 0x2fc   :  { %v2098_v12 = vmul.f32 %v4663_v37, %v2065_v45  ;;  %v2099_v21 = vmul.f32 %v4663_v37, %v2066_v11  ;;  %v2100_v18 = vmul.f32 %v4663_v37, %v2067_v46  ;;  %v2101_v2 = vmul.f32 %v4663_v37, %v2068_v52 }
 0x2fd   :  { %v2102_v29 = vmul.f32 %v4663_v37, %v2069_v28  ;;  %v2122_v25 = vadd.f32 %v4472_v63, %v2089_v38  ;;  %v2103_v55 = vmul.f32 %v4663_v37, %v2070_v35  ;;  %v2104_v10 = vmul.f32 %v4663_v37, %v2071_v23  ;;  %v5154_v38 = vld [vmem:[#allocation8_spill] sm:$0xff] }
 0x2fe   :  { %v2123_v49 = vadd.f32 %v4472_v63, %v2090_v5  ;;  %v2152_v24 = vadd.f32 %v4472_v63, %v2119_v48  ;;  %v2105_v45 = vmul.f32 %v4663_v37, %v2072_v32  ;;  %v2106_v11 = vmul.f32 %v4663_v37, %v2073_v59 }
 0x2ff   :  { %v2124_v46 = vadd.f32 %v4472_v63, %v2091_v39  ;;  %v2373_v52 = vadd.f32 %v4478_v7, %v2121_v51  ;;  %v4736_v28 = vmul.f32 %v4663_v37, %v2074_v4  ;;  %v4739_v16 = vmul.f32 %v4663_v37, %v2075_v0  ;;  %v5153_v0 = vld [vmem:[#allocation35_spill] sm:$0xff] }
 0x300   :  { %v4742_v35 = vmul.f32 %v4663_v37, %v2076_v3  ;;  %v2125_v5 = vadd.f32 %v4472_v63, %v2092_v61  ;;  %v4746_v48 = vmul.f32 %v4663_v37, %v2077_v47  ;;  %v4749_v23 = vmul.f32 %v4663_v37, %v2078_v41  ;;  %v5156_v61 = vld [vmem:[#allocation36_spill] sm:$0xff] }
 0x301   :  { %v2126_v32 = vadd.f32 %v4472_v63, %v2093_v9  ;;  %v2374_v7 = vadd.f32 %v4481_v44, %v2122_v25  ;;  %v4754_v59 = vmul.f32 %v4663_v37, %v2079_v40  ;;  %v2127_v4 = vadd.f32 %v4472_v63, %v2094_v17  ;;  %v5157_v25 = vld [vmem:[#allocation37_spill] sm:$0xff] }
 0x302   :  { %v2375_v3 = vadd.f32 %v5153_v0, %v2123_v49  ;;  %v4759_v39 = vadd.f32 %v5154_v38, %v2152_v24  ;;  %v4762_v47 = vmul.f32 %v4663_v37, %v2080_v14  ;;  %v2128_v41 = vadd.f32 %v4472_v63, %v2095_v62  ;;  %v5158_v0 = vld [vmem:[#allocation38_spill] sm:$0xff] }
 0x303   :  { %v2376_v51 = vadd.f32 %v5156_v61, %v2124_v46  ;;  %v2405_v9 = vmul.f32 0.2, %v2373_v52  ;;  %v4767_v44 = vmul.f32 %v4663_v37, %v2081_v33  ;;  %v4770_v40 = vmul.f32 %v4663_v37, %v2082_v56  ;;  %v5159_v33 = vld [vmem:[#allocation39_spill] sm:$0xff] }
 0x304   :  { %5155 = vst [vmem:[#allocation27_spill] sm:$0xff] %v4759_v39  ;;  %v2129_v17 = vadd.f32 %v4472_v63, %v2096_v54  ;;  %v2377_v49 = vadd.f32 %v5157_v25, %v2125_v5  ;;  %v2130_v24 = vadd.f32 %v4472_v63, %v2097_v53  ;;  %v2378_v14 = vadd.f32 %v5158_v0, %v2126_v32  ;;  %v5160_v5 = vld [vmem:[#allocation40_spill] sm:$0xff] }
 0x305   :  { %v2406_v38 = vmul.f32 0.2, %v2374_v7  ;;  %v2437_v39 = vmax.f32 %v2373_v52, %v2405_v9  ;;  %v4777_v62 = vmul.f32 %v4663_v37, %v2083_v6  ;;  %v2131_v46 = vadd.f32 %v4472_v63, %v2098_v12  ;;  %v5162_v52 = vld [vmem:[#allocation41_spill] sm:$0xff]  ;;  %v5163_v9 = vld [vmem:[#allocation14_spill] sm:$0xff] }
 0x306   :  { %v2379_v61 = vadd.f32 %v5159_v33, %v2127_v4  ;;  %v2407_v15 = vmul.f32 0.2, %v2375_v3  ;;  %v4782_v56 = vmul.f32 %v4663_v37, %v2084_v36  ;;  %v2132_v54 = vadd.f32 %v4472_v63, %v2099_v21 }
 0x307   :  { %v2380_v25 = vadd.f32 %v5160_v5, %v2128_v41  ;;  %v2408_v53 = vmul.f32 0.2, %v2376_v51  ;;  %2469 = vst [vmem:[%s4963_s4] sm:$0xff] %v2437_v39  ;;  %v4790_v6 = vmul.f32 %v4663_v37, %v2085_v8  ;;  %v2133_v12 = vadd.f32 %v4472_v63, %v2100_v18 }
 0x308   :  { %v2381_v32 = vadd.f32 %v5162_v52, %v2129_v17  ;;  %v2409_v4 = vmul.f32 0.2, %v2377_v49  ;;  %v2134_v36 = vadd.f32 %v4472_v63, %v2101_v2  ;;  %v2382_v0 = vadd.f32 %v5163_v9, %v2130_v24 }
 0x309   :  { %5161 = vst [vmem:[#allocation13_spill] sm:$0xff] %v4790_v6  ;;  %v2410_v21 = vmul.f32 0.2, %v2378_v14  ;;  %v2438_v33 = vmax.f32 %v2374_v7, %v2406_v38  ;;  %v2135_v41 = vadd.f32 %v4472_v63, %v2102_v29  ;;  %v2383_v5 = vadd.f32 %v4586_v50, %v2131_v46 }
 0x30a   :  { %v2411_v1 = vmul.f32 0.2, %v2379_v61  ;;  %v2439_v39 = vmax.f32 %v2375_v3, %v2407_v15  ;;  %v2136_v37 = vadd.f32 %v4472_v63, %v2103_v55  ;;  %v2384_v8 = vadd.f32 %v4589_v60, %v2132_v54 }
 0x30b   :  { %v2412_v18 = vmul.f32 0.2, %v2380_v25  ;;  %v2440_v6 = vmax.f32 %v2376_v51, %v2408_v53  ;;  %v2137_v17 = vadd.f32 %v4472_v63, %v2104_v10  ;;  %v2385_v2 = vadd.f32 %v4592_v13, %v2133_v12  ;;  %2470 = vst [vmem:[%s4963_s4 + $0x8] sm:$0xff] %v2438_v33 }
 0x30c   :  { %v2413_v52 = vmul.f32 0.2, %v2381_v32  ;;  %v2441_v24 = vmax.f32 %v2377_v49, %v2409_v4  ;;  %v2138_v7 = vadd.f32 %v4472_v63, %v2105_v45  ;;  %v4804_v29 = vadd.f32 %v4595_v31, %v2134_v36  ;;  %2471 = vst [vmem:[%s4963_s4 + $0x10] sm:$0xff] %v2439_v39 }
 0x30d   :  { %v2414_v50 = vmul.f32 0.2, %v2382_v0  ;;  %v2442_v38 = vmax.f32 %v2378_v14, %v2410_v21  ;;  %v2139_v60 = vadd.f32 %v4472_v63, %v2106_v11  ;;  %v4811_v15 = vadd.f32 %v4598_v26, %v2135_v41  ;;  %2472 = vst [vmem:[%s4963_s4 + $0x18] sm:$0xff] %v2440_v6 }
 0x30e   :  { %v2415_v55 = vmul.f32 0.2, %v2383_v5  ;;  %v2443_v13 = vmax.f32 %v2379_v61, %v2411_v1  ;;  %v2140_v31 = vadd.f32 %v4472_v63, %v4736_v28  ;;  %v4819_v10 = vadd.f32 %v4601_v34, %v2136_v37  ;;  %2473 = vst [vmem:[%s4963_s4 + $0x20] sm:$0xff] %v2441_v24  ;;  %v5166_v37 = vld [vmem:[#allocation21_spill] sm:$0xff]  ;;  %v5169_v24 = vld [vmem:[#allocation24_spill] sm:$0xff] }
 0x30f   :  { %v2416_v45 = vmul.f32 0.2, %v2384_v8  ;;  %v2444_v3 = vmax.f32 %v2380_v25, %v2412_v18  ;;  %v2141_v26 = vadd.f32 %v4472_v63, %v4739_v16  ;;  %v4827_v1 = vadd.f32 %v4604_v30, %v2137_v17  ;;  %2474 = vst [vmem:[%s4963_s4 + $0x28] sm:$0xff] %v2442_v38 }
 0x310   :  { %v2417_v11 = vmul.f32 0.2, %v2385_v2  ;;  %v2445_v51 = vmax.f32 %v2381_v32, %v2413_v52  ;;  %v2142_v34 = vadd.f32 %v4472_v63, %v4742_v35  ;;  %v2390_v28 = vadd.f32 %v4607_v42, %v2138_v7  ;;  %2475 = vst [vmem:[%s4963_s4 + $0x30] sm:$0xff] %v2443_v13 }
 0x311   :  { %v2418_v49 = vmul.f32 0.2, %v4804_v29  ;;  %v2446_v14 = vmax.f32 %v2382_v0, %v2414_v50  ;;  %v2143_v30 = vadd.f32 %v4472_v63, %v4746_v48  ;;  %v2391_v16 = vadd.f32 %v4610_v22, %v2139_v60  ;;  %2476 = vst [vmem:[%s4963_s4 + $0x38] sm:$0xff] %v2444_v3  ;;  %v5171_v60 = vld [vmem:[#allocation26_spill] sm:$0xff] }
 0x312   :  { %v2419_v46 = vmul.f32 0.2, %v4811_v15  ;;  %v2447_v61 = vmax.f32 %v2383_v5, %v2415_v55  ;;  %v2144_v42 = vadd.f32 %v4472_v63, %v4749_v23  ;;  %v2392_v35 = vadd.f32 %v4613_v58, %v2140_v31  ;;  %2477 = vst [vmem:[%s4963_s4 + $0x40] sm:$0xff] %v2445_v51 }
 0x313   :  { %v2420_v54 = vmul.f32 0.2, %v4819_v10  ;;  %v2448_v25 = vmax.f32 %v2384_v8, %v2416_v45  ;;  %v2145_v22 = vadd.f32 %v4472_v63, %v4754_v59  ;;  %v2393_v48 = vadd.f32 %v4616_v57, %v2141_v26  ;;  %2478 = vst [vmem:[%s4963_s4 + $0x48] sm:$0xff] %v2446_v14 }
 0x314   :  { %v2421_v53 = vmul.f32 0.2, %v4827_v1  ;;  %v2449_v6 = vmax.f32 %v2385_v2, %v2417_v11  ;;  %v2146_v58 = vadd.f32 %v4472_v63, %v4762_v47  ;;  %v2394_v23 = vadd.f32 %v4620_v20, %v2142_v34  ;;  %2479 = vst [vmem:[%s4963_s4 + $0x50] sm:$0xff] %v2447_v61  ;;  %v5168_v2 = vld [vmem:[#allocation3_spill] sm:$0xff] }
 0x315   :  { %v2422_v12 = vmul.f32 0.2, %v2390_v28  ;;  %v2450_v32 = vmax.f32 %v4804_v29, %v2418_v49  ;;  %v2147_v57 = vadd.f32 %v4472_v63, %v4767_v44  ;;  %v2395_v59 = vadd.f32 %v4623_v19, %v2143_v30  ;;  %2480 = vst [vmem:[%s4963_s4 + $0x58] sm:$0xff] %v2448_v25 }
 0x316   :  { %v2423_v4 = vmul.f32 0.2, %v2391_v16  ;;  %v2451_v36 = vmax.f32 %v4811_v15, %v2419_v46  ;;  %v2148_v20 = vadd.f32 %v4472_v63, %v4770_v40  ;;  %v2396_v47 = vadd.f32 %v4626_v27, %v2144_v42  ;;  %2481 = vst [vmem:[%s4963_s4 + $0x60] sm:$0xff] %v2449_v6  ;;  %v5164_v40 = vld [vmem:[#allocation19_spill] sm:$0xff] }
 0x317   :  { %v2424_v9 = vmul.f32 0.2, %v2392_v35  ;;  %v2452_v0 = vmax.f32 %v4819_v10, %v2420_v54  ;;  %v2149_v19 = vadd.f32 %v4472_v63, %v4777_v62  ;;  %v2397_v44 = vadd.f32 %v4629_v43, %v2145_v22  ;;  %2482 = vst [vmem:[%s4963_s4 + $0x68] sm:$0xff] %v2450_v32  ;;  %v5165_v62 = vld [vmem:[#allocation13_spill] sm:$0xff]  ;;  %v5172_v46 = vld [vmem:[#allocation27_spill] sm:$0xff] }
 0x318   :  { %v2425_v21 = vmul.f32 0.2, %v2393_v48  ;;  %v2453_v33 = vmax.f32 %v4827_v1, %v2421_v53  ;;  %v2150_v27 = vadd.f32 %v4472_v63, %v4782_v56  ;;  %v2398_v41 = vadd.f32 %v5164_v40, %v2146_v58  ;;  %2483 = vst [vmem:[%s4963_s4 + $0x70] sm:$0xff] %v2451_v36  ;;  %v5167_v56 = vld [vmem:[#allocation15_spill] sm:$0xff] }
 0x319   :  { %v2426_v5 = vmul.f32 0.2, %v2394_v23  ;;  %v2454_v39 = vmax.f32 %v2390_v28, %v2422_v12  ;;  %v2151_v43 = vadd.f32 %v4472_v63, %v5165_v62  ;;  %v2399_v8 = vadd.f32 %v5166_v37, %v2147_v57  ;;  %2484 = vst [vmem:[%s4963_s4 + $0x78] sm:$0xff] %v2452_v0  ;;  %v5170_v63 = vld [vmem:[#allocation17_spill] sm:$0xff] }
 0x31a   :  { %v2427_v18 = vmul.f32 0.2, %v2395_v59  ;;  %v2455_v17 = vmax.f32 %v2391_v16, %v2423_v4  ;;  %v2370_v52 = vadd.f32 %v5168_v2, %v5167_v56  ;;  %v2400_v7 = vadd.f32 %v5169_v24, %v2148_v20  ;;  %2485 = vst [vmem:[%s4963_s4 + $0x80] sm:$0xff] %v2453_v33 }
 0x31b   :  { %v2428_v29 = vmul.f32 0.2, %v2396_v47  ;;  %v2456_v50 = vmax.f32 %v2392_v35, %v2424_v9  ;;  %v2371_v38 = vadd.f32 %v5168_v2, %v5170_v63  ;;  %v2401_v15 = vadd.f32 %v5171_v60, %v2149_v19  ;;  %2486 = vst [vmem:[%s4963_s4 + $0x88] sm:$0xff] %v2454_v39 }
 0x31c   :  { %v2429_v55 = vmul.f32 0.2, %v2397_v44  ;;  %v2457_v13 = vmax.f32 %v2393_v48, %v2425_v21  ;;  %v2402_v31 = vadd.f32 %v2370_v52, %v2150_v27  ;;  %v2430_v10 = vmul.f32 0.2, %v2398_v41  ;;  %2487 = vst [vmem:[%s4963_s4 + $0x90] sm:$0xff] %v2455_v17 }
 0x31d   :  { %v2458_v45 = vmax.f32 %v2394_v23, %v2426_v5  ;;  %v2403_v3 = vadd.f32 %v2371_v38, %v2151_v43  ;;  %v2431_v26 = vmul.f32 0.2, %v2399_v8  ;;  %v2459_v1 = vmax.f32 %v2395_v59, %v2427_v18  ;;  %2488 = vst [vmem:[%s4963_s4 + $0x98] sm:$0xff] %v2456_v50 }
 0x31e   :  { %v2432_v11 = vmul.f32 0.2, %v2400_v7  ;;  %v2460_v51 = vmax.f32 %v2396_v47, %v2428_v29  ;;  %v2433_v34 = vmul.f32 0.2, %v2401_v15  ;;  %v2461_v28 = vmax.f32 %v2397_v44, %v2429_v55  ;;  %2489 = vst [vmem:[%s4963_s4 + $0xa0] sm:$0xff] %v2457_v13 }
 0x31f   :  { %v2434_v49 = vmul.f32 0.2, %v2402_v31  ;;  %v2462_v14 = vmax.f32 %v2398_v41, %v2430_v10  ;;  %2490 = vst [vmem:[%s4963_s4 + $0xa8] sm:$0xff] %v2458_v45  ;;  %v2435_v30 = vmul.f32 0.2, %v2403_v3  ;;  %v2463_v16 = vmax.f32 %v2399_v8, %v2431_v26 }
 0x320   :  { %2491 = vst [vmem:[%s4963_s4 + $0xb0] sm:$0xff] %v2459_v1  ;;  %v2436_v61 = vmul.f32 0.2, %v5172_v46  ;;  %v2464_v42 = vmax.f32 %v2400_v7, %v2432_v11  ;;  %v2465_v35 = vmax.f32 %v2401_v15, %v2433_v34 }
 0x321   :  { %2492 = vst [vmem:[%s4963_s4 + $0xb8] sm:$0xff] %v2460_v51  ;;  %v2466_v54 = vmax.f32 %v2402_v31, %v2434_v49  ;;  %v2467_v25 = vmax.f32 %v2403_v3, %v2435_v30 }
 0x322   :  { %2493 = vst [vmem:[%s4963_s4 + $0xc0] sm:$0xff] %v2461_v28  ;;  %v2468_v22 = vmax.f32 %v5172_v46, %v2436_v61 }
 0x323   :  { %2494 = vst [vmem:[%s4963_s4 + $0xc8] sm:$0xff] %v2462_v14 }
 0x324   :  { %2495 = vst [vmem:[%s4963_s4 + $0xd0] sm:$0xff] %v2463_v16 }
 0x325   :  { %2496 = vst [vmem:[%s4963_s4 + $0xd8] sm:$0xff] %v2464_v42 }
 0x326   :  { %2497 = vst [vmem:[%s4963_s4 + $0xe0] sm:$0xff] %v2465_v35 }
 0x327   :  { %2498 = vst [vmem:[%s4963_s4 + $0xe8] sm:$0xff] %v2466_v54 }
 0x328   :  { %2499 = vst [vmem:[%s4963_s4 + $0xf0] sm:$0xff] %v2467_v25 }
 0x329   :  { %2500 = vst [vmem:[%s4963_s4 + $0xf8] sm:$0xff] %v2468_v22 }

</bundles_post_ra>
